<compile_context>
chip_gen: v7x
topology: tpu7x:2x2x1
jax: 0.10.0
libtpu: 0.0.40
codegen_flags: <defaults>
</compile_context>

<pallas_src>
import jax
import jax.numpy as jnp
from jax.experimental import pallas as pl
from jax.experimental.pallas import tpu as pltpu

BN_EPS = 1e-5


# --------------------------------- kernel ----------------------------------

def vibnet_kernel(
    x_ref, w_in_ref, b_in_ref,
    w1_ref, b1_ref, w2_ref, b2_ref,          # BN already folded into these
    wv_ref, bv_ref,                           # attention value projection
    wo1_ref, bo1_ref, wo2_ref, bo2_ref,       # output head
    out_ref,
):
    f32 = jnp.float32

    def linear(h, w, b):
        return jnp.dot(h, w, preferred_element_type=f32) + b

    # --- input projection + ReLU ---
    h = jnp.maximum(linear(x_ref[...], w_in_ref[...], b_in_ref[...]), 0.0)

    # --- residual blocks (BN folded into the Linears; Dropout = identity) ---
    num_layers = w1_ref.shape[0]
    for l in range(num_layers):  # static unroll: small L, full LLO visibility
        residual = h
        y = jnp.maximum(linear(h, w1_ref[l], b1_ref[l]), 0.0)
        # TODO(synk): Dropout(0.1) is identity in eval mode; training-mode RNG mask not emitted.
        y = linear(y, w2_ref[l], b2_ref[l])
        h = jnp.maximum(y + residual, 0.0)

    # --- self attention over a length-1 sequence: softmax(singleton) == 1 ---
    attended = linear(h, wv_ref[...], bv_ref[...])

    # --- output head: Linear -> ReLU -> (Dropout eval) -> Linear ---
    o = jnp.maximum(linear(attended, wo1_ref[...], bo1_ref[...]), 0.0)
    out_ref[...] = linear(o, wo2_ref[...], bo2_ref[...])


# ------------------------------ host helpers --------------------------------

def _round_up(n, m):
    return ((n + m - 1) // m) * m


def _cdiv(a, b):
    return -(-a // b)


def pick_group_size(batch_size, preferred=8):
    """Largest power-of-two packing factor <= preferred that divides the batch."""
    g = preferred
    while g > 1 and batch_size % g:
        g //= 2
    return max(g, 1)


def fold_batchnorm(p):
    """Fold eval-mode BatchNorm1d into the preceding Linear (host-side)."""
    scale1 = p["g1"] * jax.lax.rsqrt(p["v1"] + BN_EPS)   # (L, 1, H)
    scale2 = p["g2"] * jax.lax.rsqrt(p["v2"] + BN_EPS)
    return {
        "w_in": p["w_in"], "b_in": p["b_in"],
        "w1": p["w1"] * scale1,                                   # scales output features
        "b1": (p["b1"] - p["m1"]) * scale1 + p["be1"],
        "w2": p["w2"] * scale2,
        "b2": (p["b2"] - p["m2"]) * scale2 + p["be2"],
        "wv": p["wv"], "bv": p["bv"],
        "wo1": p["wo1"], "bo1": p["bo1"],
        "wo2": p["wo2"], "bo2": p["bo2"],
    }


def prepare_params(params, *, group_size=8):
    """Fold BN and lane-pack the weights (block-diagonal over G groups).

    Call this ONCE (hoisted out of the forward); the result is reused across calls.
    """
    G = int(group_size)
    fp = fold_batchnorm(params)
    eye = jnp.eye(G, dtype=jnp.float32)

    def bd(w):                       # (din, dout) -> (G*din, G*dout) block-diagonal
        return jnp.kron(eye, w)

    def bd_stack(w):                 # (L, din, dout) -> (L, G*din, G*dout)
        return jnp.stack([bd(w[l]) for l in range(w.shape[0])], axis=0)

    def tile_b(b):                   # (1, dout) -> (1, G*dout)
        return jnp.tile(b, (1, G))

    def tile_b_stack(b):             # (L, 1, dout) -> (L, 1, G*dout)
        return jnp.tile(b, (1, 1, G))

    return {
        "G": G,
        "in_size": int(params["w_in"].shape[0]),
        "out_size": int(params["wo2"].shape[1]),
        "w_in": bd(fp["w_in"]), "b_in": tile_b(fp["b_in"]),
        "w1": bd_stack(fp["w1"]), "b1": tile_b_stack(fp["b1"]),
        "w2": bd_stack(fp["w2"]), "b2": tile_b_stack(fp["b2"]),
        "wv": bd(fp["wv"]), "bv": tile_b(fp["bv"]),
        "wo1": bd(fp["wo1"]), "bo1": tile_b(fp["bo1"]),
        "wo2": bd(fp["wo2"]), "bo2": tile_b(fp["bo2"]),
    }


# ------------------------------ host wrapper --------------------------------

def vibnet_forward(x, prepped, *, batch_tile=4096):
    """x: (B, input_size) float32.  prepped: dict from prepare_params (BN-folded, lane-packed)."""
    G = prepped["G"]
    in_size = prepped["in_size"]
    out_size = prepped["out_size"]

    B, xin = x.shape
    assert xin == in_size, "input feature width mismatch"
    assert B % G == 0, "batch must be divisible by the packing group size (see pick_group_size)"

    R = B // G                       # packed rows
    gin, gout = G * in_size, G * out_size
    GH = prepped["w_in"].shape[1]    # packed hidden width (G * hidden)
    L = prepped["w1"].shape[0]

    # Packed-row tile: multiple of 8 sublanes; each tile carries ~batch_tile raw
    # samples so the ~0.35us/grid-step fixed overhead is well amortised.
    tb = _round_up(min(max(batch_tile // G, 1), R), 8)
    tb = max(tb, 8)
    # Guarantee >= 2 grid tiles when possible so v7x can shard across both TCs.
    if R >= 16 and _cdiv(R, tb) < 2:
        tb = _round_up(_cdiv(R, 2), 8)
    grid = (_cdiv(R, tb),)           # last block clipped by Pallas -> no host pad/slice

    weights = (
        prepped["w_in"], prepped["b_in"],
        prepped["w1"], prepped["b1"], prepped["w2"], prepped["b2"],
        prepped["wv"], prepped["bv"],
        prepped["wo1"], prepped["bo1"], prepped["wo2"], prepped["bo2"],
    )

    # VMEM budget: double-buffered x/out tiles + 2x weights + live activations.
    weight_bytes = sum(int(w.size) for w in weights) * 4
    io_bytes = 2 * (tb * gin + tb * gout) * 4
    act_bytes = 6 * tb * GH * 4
    est = 2 * weight_bytes + io_bytes + act_bytes
    vmem_limit = int(min(56 << 20, max(24 << 20, 2 * est)))   # headroom under v7x 64 MiB

    def const_spec(a):
        nd = a.ndim
        return pl.BlockSpec(a.shape, lambda i, _nd=nd: (0,) * _nd)  # VMEM-resident across grid

    in_specs = [pl.BlockSpec((tb, gin), lambda i: (i, 0))]
    in_specs += [const_spec(w) for w in weights]
    out_spec = pl.BlockSpec((tb, gout), lambda i: (i, 0))  # full (lane-dense) feature width

    xp = x.reshape(R, gin)           # contiguous row-major regroup: free, no pad

    out = pl.pallas_call(
        vibnet_kernel,
        out_shape=jax.ShapeDtypeStruct((R, gout), jnp.float32),
        grid=grid,
        in_specs=in_specs,
        out_specs=out_spec,
        compiler_params=pltpu.CompilerParams(
            dimension_semantics=("parallel",),   # shard batch tiles across TCs on v7x
            vmem_limit_bytes=vmem_limit,
        ),
    )(xp, *weights)

    return out.reshape(B, out_size)


# ----------------------------- parameter setup ------------------------------

def _linear_init(key, fan_in, fan_out):
    k1, k2 = jax.random.split(key)
    bound = 1.0 / jnp.sqrt(jnp.float32(fan_in))
    w = jax.random.uniform(k1, (fan_in, fan_out), jnp.float32, -bound, bound)
    b = jax.random.uniform(k2, (1, fan_out), jnp.float32, -bound, bound)
    return w, b


def init_params(key, input_size, hidden_size, output_size, num_layers):
    keys = jax.random.split(key, 16)
    p = {}
    p["w_in"], p["b_in"] = _linear_init(keys[0], input_size, hidden_size)

    w1s, b1s, w2s, b2s = [], [], [], []
    g1s, be1s, m1s, v1s = [], [], [], []
    g2s, be2s, m2s, v2s = [], [], [], []
    for l in range(num_layers):
        lk = jax.random.split(keys[1 + l], 8)
        w1, b1 = _linear_init(lk[0], hidden_size, hidden_size)
        w2, b2 = _linear_init(lk[1], hidden_size, hidden_size)
        w1s.append(w1); b1s.append(b1); w2s.append(w2); b2s.append(b2)
        # BatchNorm1d eval-mode parameters (deterministic, non-trivial)
        g1s.append(1.0 + 0.1 * jax.random.normal(lk[2], (1, hidden_size), jnp.float32))
        be1s.append(0.05 * jax.random.normal(lk[3], (1, hidden_size), jnp.float32))
        m1s.append(0.05 * jax.random.normal(lk[4], (1, hidden_size), jnp.float32))
        v1s.append(1.0 + 0.1 * jax.random.uniform(lk[5], (1, hidden_size), jnp.float32))
        g2s.append(1.0 + 0.1 * jax.random.normal(lk[6], (1, hidden_size), jnp.float32))
        be2s.append(0.05 * jax.random.normal(lk[7], (1, hidden_size), jnp.float32))
        m2s.append(0.05 * jax.random.normal(jax.random.fold_in(lk[7], 1), (1, hidden_size), jnp.float32))
        v2s.append(1.0 + 0.1 * jax.random.uniform(jax.random.fold_in(lk[7], 2), (1, hidden_size), jnp.float32))

    stack = lambda xs: jnp.stack(xs, axis=0)
    p["w1"], p["b1"], p["w2"], p["b2"] = map(stack, (w1s, b1s, w2s, b2s))
    p["g1"], p["be1"], p["m1"], p["v1"] = map(stack, (g1s, be1s, m1s, v1s))
    p["g2"], p["be2"], p["m2"], p["v2"] = map(stack, (g2s, be2s, m2s, v2s))

    p["wq"], p["bq"] = _linear_init(keys[10], hidden_size, hidden_size)
    p["wk"], p["bk"] = _linear_init(keys[11], hidden_size, hidden_size)
    p["wv"], p["bv"] = _linear_init(keys[12], hidden_size, hidden_size)
    p["wo1"], p["bo1"] = _linear_init(keys[13], hidden_size, hidden_size // 2)
    p["wo2"], p["bo2"] = _linear_init(keys[14], hidden_size // 2, output_size)
    return p


# ------------------------ pure-JAX reference (check) ------------------------

def vibnet_reference(x, p):
    """Faithful eval-mode forward (explicit BN, full seq-len-1 attention)."""
    h = jnp.maximum(x @ p["w_in"] + p["b_in"], 0.0)
    L = p["w1"].shape[0]
    for l in range(L):
        res = h
        y = h @ p["w1"][l] + p["b1"][l]
        y = (y - p["m1"][l]) * (p["g1"][l] / jnp.sqrt(p["v1"][l] + BN_EPS)) + p["be1"][l]
        y = jnp.maximum(y, 0.0)
        y = y @ p["w2"][l] + p["b2"][l]
        y = (y - p["m2"][l]) * (p["g2"][l] / jnp.sqrt(p["v2"][l] + BN_EPS)) + p["be2"][l]
        h = jnp.maximum(y + res, 0.0)
    H = p["wq"].shape[0]
    q = h @ p["wq"] + p["bq"]
    k = h @ p["wk"] + p["bk"]
    v = h @ p["wv"] + p["bv"]
    s = jnp.sum(q * k, axis=-1, keepdims=True) / jnp.sqrt(jnp.float32(H))
    attn = jax.nn.softmax(s, axis=-1)  # singleton axis -> 1.0
    attended = attn * v
    o = jnp.maximum(attended @ p["wo1"] + p["bo1"], 0.0)
    return o @ p["wo2"] + p["bo2"]


if __name__ == "__main__":
    # Small demo shapes.  B=128 with G=8 -> 16 packed rows of width 128/256/192 lanes;
    # batch_tile=64 raw samples -> 8-row tiles -> grid=2 (exercises multi-tile parallel grid).
    B, INPUT_SIZE, HIDDEN, OUTPUT, NUM_LAYERS = 128, 16, 32, 24, 3

    key = jax.random.PRNGKey(0)
    kx, kp = jax.random.split(key)
    x = jax.random.normal(kx, (B, INPUT_SIZE), jnp.float32)
    params = init_params(kp, INPUT_SIZE, HIDDEN, OUTPUT, NUM_LAYERS)

    G = pick_group_size(B, preferred=8)                 # 8 -> 256 hidden lanes, 192 output lanes
    prepped = prepare_params(params, group_size=G)      # hoisted: BN fold + block-diag pack, once

    out = jax.block_until_ready(vibnet_forward(x, prepped, batch_tile=64))
    ref = jax.block_until_ready(vibnet_reference(x, params))

    assert out.shape == (B, OUTPUT) and out.dtype == jnp.float32
    assert jnp.allclose(out, ref, rtol=1e-4, atol=1e-4), "mismatch vs JAX reference"
    print("KERNEL_OK")
</pallas_src>

<mosaic_0001>
module attributes {stable_mosaic.version = 11 : i64} {
  func.func @vibnet_kernel(%arg0: i32, %arg1: memref<8x128xf32, #tpu.memory_space<vmem>>, %arg2: memref<128x256xf32, #tpu.memory_space<vmem>>, %arg3: memref<1x256xf32, #tpu.memory_space<vmem>>, %arg4: memref<3x256x256xf32, #tpu.memory_space<vmem>>, %arg5: memref<3x1x256xf32, #tpu.memory_space<vmem>>, %arg6: memref<3x256x256xf32, #tpu.memory_space<vmem>>, %arg7: memref<3x1x256xf32, #tpu.memory_space<vmem>>, %arg8: memref<256x256xf32, #tpu.memory_space<vmem>>, %arg9: memref<1x256xf32, #tpu.memory_space<vmem>>, %arg10: memref<256x128xf32, #tpu.memory_space<vmem>>, %arg11: memref<1x128xf32, #tpu.memory_space<vmem>>, %arg12: memref<128x192xf32, #tpu.memory_space<vmem>>, %arg13: memref<1x192xf32, #tpu.memory_space<vmem>>, %arg14: memref<8x192xf32, #tpu.memory_space<vmem>>) attributes {dimension_semantics = [#tpu.dimension_semantics<parallel>], iteration_bounds = array<i64: 2>, scalar_prefetch = 0 : i64, scratch_operands = 0 : i64, tpu.core_type = #tpu.core_type<tc>, window_params = [{transform_indices = @transform_0, window_bounds = array<i64: 8, 128>}, {pipeline_mode = #tpu.pipeline_mode<synchronous>, transform_indices = @transform_1, window_bounds = array<i64: 128, 256>}, {pipeline_mode = #tpu.pipeline_mode<synchronous>, transform_indices = @transform_2, window_bounds = array<i64: 1, 256>}, {pipeline_mode = #tpu.pipeline_mode<synchronous>, transform_indices = @transform_3, window_bounds = array<i64: 3, 256, 256>}, {pipeline_mode = #tpu.pipeline_mode<synchronous>, transform_indices = @transform_4, window_bounds = array<i64: 3, 1, 256>}, {pipeline_mode = #tpu.pipeline_mode<synchronous>, transform_indices = @transform_5, window_bounds = array<i64: 3, 256, 256>}, {pipeline_mode = #tpu.pipeline_mode<synchronous>, transform_indices = @transform_6, window_bounds = array<i64: 3, 1, 256>}, {pipeline_mode = #tpu.pipeline_mode<synchronous>, transform_indices = @transform_7, window_bounds = array<i64: 256, 256>}, {pipeline_mode = #tpu.pipeline_mode<synchronous>, transform_indices = @transform_8, window_bounds = array<i64: 1, 256>}, {pipeline_mode = #tpu.pipeline_mode<synchronous>, transform_indices = @transform_9, window_bounds = array<i64: 256, 128>}, {pipeline_mode = #tpu.pipeline_mode<synchronous>, transform_indices = @transform_10, window_bounds = array<i64: 1, 128>}, {pipeline_mode = #tpu.pipeline_mode<synchronous>, transform_indices = @transform_11, window_bounds = array<i64: 128, 192>}, {pipeline_mode = #tpu.pipeline_mode<synchronous>, transform_indices = @transform_12, window_bounds = array<i64: 1, 192>}, {transform_indices = @transform_13, window_bounds = array<i64: 8, 192>}]} {
    %c0 = arith.constant 0 : index
    %c0_0 = arith.constant 0 : index
    %0 = vector.load %arg1[%c0, %c0_0] : memref<8x128xf32, #tpu.memory_space<vmem>>, vector<8x128xf32>
    %c0_1 = arith.constant 0 : index
    %c0_2 = arith.constant 0 : index
    %1 = vector.load %arg2[%c0_1, %c0_2] : memref<128x256xf32, #tpu.memory_space<vmem>>, vector<128x256xf32>
    %c0_3 = arith.constant 0 : index
    %c0_4 = arith.constant 0 : index
    %2 = vector.load %arg3[%c0_3, %c0_4] : memref<1x256xf32, #tpu.memory_space<vmem>>, vector<1x256xf32>
    %cst = arith.constant dense<0.000000e+00> : vector<8x256xf32>
    %3 = tpu.matmul %0, %1, %cst {dimension_numbers = #tpu.dot_dimension_numbers<[1], [0], [0], [1], [0, 0, 1, 1], [], []>} : vector<8x128xf32>, vector<128x256xf32>, vector<8x256xf32> -> vector<8x256xf32>
    %4 = vector.broadcast %2 : vector<1x256xf32> to vector<8x256xf32>
    %5 = arith.addf %3, %4 : vector<8x256xf32>
    %cst_5 = arith.constant 0.000000e+00 : f32
    %6 = vector.broadcast %cst_5 : f32 to vector<8x256xf32>
    %7 = arith.maximumf %5, %6 : vector<8x256xf32>
    %c0_6 = arith.constant 0 : index
    %c0_7 = arith.constant 0 : index
    %c0_8 = arith.constant 0 : index
    %8 = vector.load %arg4[%c0_6, %c0_7, %c0_8] : memref<3x256x256xf32, #tpu.memory_space<vmem>>, vector<1x256x256xf32>
    %9 = vector.shape_cast %8 : vector<1x256x256xf32> to vector<256x256xf32>
    %c0_9 = arith.constant 0 : index
    %c0_10 = arith.constant 0 : index
    %c0_11 = arith.constant 0 : index
    %10 = vector.load %arg5[%c0_9, %c0_10, %c0_11] : memref<3x1x256xf32, #tpu.memory_space<vmem>>, vector<1x1x256xf32>
    %11 = vector.shape_cast %10 : vector<1x1x256xf32> to vector<1x256xf32>
    %cst_12 = arith.constant dense<0.000000e+00> : vector<8x256xf32>
    %12 = tpu.matmul %7, %9, %cst_12 {dimension_numbers = #tpu.dot_dimension_numbers<[1], [0], [0], [1], [0, 0, 1, 1], [], []>} : vector<8x256xf32>, vector<256x256xf32>, vector<8x256xf32> -> vector<8x256xf32>
    %13 = vector.broadcast %11 : vector<1x256xf32> to vector<8x256xf32>
    %14 = arith.addf %12, %13 : vector<8x256xf32>
    %cst_13 = arith.constant 0.000000e+00 : f32
    %15 = vector.broadcast %cst_13 : f32 to vector<8x256xf32>
    %16 = arith.maximumf %14, %15 : vector<8x256xf32>
    %c0_14 = arith.constant 0 : index
    %c0_15 = arith.constant 0 : index
    %c0_16 = arith.constant 0 : index
    %17 = vector.load %arg6[%c0_14, %c0_15, %c0_16] : memref<3x256x256xf32, #tpu.memory_space<vmem>>, vector<1x256x256xf32>
    %18 = vector.shape_cast %17 : vector<1x256x256xf32> to vector<256x256xf32>
    %c0_17 = arith.constant 0 : index
    %c0_18 = arith.constant 0 : index
    %c0_19 = arith.constant 0 : index
    %19 = vector.load %arg7[%c0_17, %c0_18, %c0_19] : memref<3x1x256xf32, #tpu.memory_space<vmem>>, vector<1x1x256xf32>
    %20 = vector.shape_cast %19 : vector<1x1x256xf32> to vector<1x256xf32>
    %cst_20 = arith.constant dense<0.000000e+00> : vector<8x256xf32>
    %21 = tpu.matmul %16, %18, %cst_20 {dimension_numbers = #tpu.dot_dimension_numbers<[1], [0], [0], [1], [0, 0, 1, 1], [], []>} : vector<8x256xf32>, vector<256x256xf32>, vector<8x256xf32> -> vector<8x256xf32>
    %22 = vector.broadcast %20 : vector<1x256xf32> to vector<8x256xf32>
    %23 = arith.addf %21, %22 : vector<8x256xf32>
    %24 = arith.addf %23, %7 : vector<8x256xf32>
    %cst_21 = arith.constant 0.000000e+00 : f32
    %25 = vector.broadcast %cst_21 : f32 to vector<8x256xf32>
    %26 = arith.maximumf %24, %25 : vector<8x256xf32>
    %c1 = arith.constant 1 : index
    %c0_22 = arith.constant 0 : index
    %c0_23 = arith.constant 0 : index
    %27 = vector.load %arg4[%c1, %c0_22, %c0_23] : memref<3x256x256xf32, #tpu.memory_space<vmem>>, vector<1x256x256xf32>
    %28 = vector.shape_cast %27 : vector<1x256x256xf32> to vector<256x256xf32>
    %c1_24 = arith.constant 1 : index
    %c0_25 = arith.constant 0 : index
    %c0_26 = arith.constant 0 : index
    %29 = vector.load %arg5[%c1_24, %c0_25, %c0_26] : memref<3x1x256xf32, #tpu.memory_space<vmem>>, vector<1x1x256xf32>
    %30 = vector.shape_cast %29 : vector<1x1x256xf32> to vector<1x256xf32>
    %cst_27 = arith.constant dense<0.000000e+00> : vector<8x256xf32>
    %31 = tpu.matmul %26, %28, %cst_27 {dimension_numbers = #tpu.dot_dimension_numbers<[1], [0], [0], [1], [0, 0, 1, 1], [], []>} : vector<8x256xf32>, vector<256x256xf32>, vector<8x256xf32> -> vector<8x256xf32>
    %32 = vector.broadcast %30 : vector<1x256xf32> to vector<8x256xf32>
    %33 = arith.addf %31, %32 : vector<8x256xf32>
    %cst_28 = arith.constant 0.000000e+00 : f32
    %34 = vector.broadcast %cst_28 : f32 to vector<8x256xf32>
    %35 = arith.maximumf %33, %34 : vector<8x256xf32>
    %c1_29 = arith.constant 1 : index
    %c0_30 = arith.constant 0 : index
    %c0_31 = arith.constant 0 : index
    %36 = vector.load %arg6[%c1_29, %c0_30, %c0_31] : memref<3x256x256xf32, #tpu.memory_space<vmem>>, vector<1x256x256xf32>
    %37 = vector.shape_cast %36 : vector<1x256x256xf32> to vector<256x256xf32>
    %c1_32 = arith.constant 1 : index
    %c0_33 = arith.constant 0 : index
    %c0_34 = arith.constant 0 : index
    %38 = vector.load %arg7[%c1_32, %c0_33, %c0_34] : memref<3x1x256xf32, #tpu.memory_space<vmem>>, vector<1x1x256xf32>
    %39 = vector.shape_cast %38 : vector<1x1x256xf32> to vector<1x256xf32>
    %cst_35 = arith.constant dense<0.000000e+00> : vector<8x256xf32>
    %40 = tpu.matmul %35, %37, %cst_35 {dimension_numbers = #tpu.dot_dimension_numbers<[1], [0], [0], [1], [0, 0, 1, 1], [], []>} : vector<8x256xf32>, vector<256x256xf32>, vector<8x256xf32> -> vector<8x256xf32>
    %41 = vector.broadcast %39 : vector<1x256xf32> to vector<8x256xf32>
    %42 = arith.addf %40, %41 : vector<8x256xf32>
    %43 = arith.addf %42, %26 : vector<8x256xf32>
    %cst_36 = arith.constant 0.000000e+00 : f32
    %44 = vector.broadcast %cst_36 : f32 to vector<8x256xf32>
    %45 = arith.maximumf %43, %44 : vector<8x256xf32>
    %c2 = arith.constant 2 : index
    %c0_37 = arith.constant 0 : index
    %c0_38 = arith.constant 0 : index
    %46 = vector.load %arg4[%c2, %c0_37, %c0_38] : memref<3x256x256xf32, #tpu.memory_space<vmem>>, vector<1x256x256xf32>
    %47 = vector.shape_cast %46 : vector<1x256x256xf32> to vector<256x256xf32>
    %c2_39 = arith.constant 2 : index
    %c0_40 = arith.constant 0 : index
    %c0_41 = arith.constant 0 : index
    %48 = vector.load %arg5[%c2_39, %c0_40, %c0_41] : memref<3x1x256xf32, #tpu.memory_space<vmem>>, vector<1x1x256xf32>
    %49 = vector.shape_cast %48 : vector<1x1x256xf32> to vector<1x256xf32>
    %cst_42 = arith.constant dense<0.000000e+00> : vector<8x256xf32>
    %50 = tpu.matmul %45, %47, %cst_42 {dimension_numbers = #tpu.dot_dimension_numbers<[1], [0], [0], [1], [0, 0, 1, 1], [], []>} : vector<8x256xf32>, vector<256x256xf32>, vector<8x256xf32> -> vector<8x256xf32>
    %51 = vector.broadcast %49 : vector<1x256xf32> to vector<8x256xf32>
    %52 = arith.addf %50, %51 : vector<8x256xf32>
    %cst_43 = arith.constant 0.000000e+00 : f32
    %53 = vector.broadcast %cst_43 : f32 to vector<8x256xf32>
    %54 = arith.maximumf %52, %53 : vector<8x256xf32>
    %c2_44 = arith.constant 2 : index
    %c0_45 = arith.constant 0 : index
    %c0_46 = arith.constant 0 : index
    %55 = vector.load %arg6[%c2_44, %c0_45, %c0_46] : memref<3x256x256xf32, #tpu.memory_space<vmem>>, vector<1x256x256xf32>
    %56 = vector.shape_cast %55 : vector<1x256x256xf32> to vector<256x256xf32>
    %c2_47 = arith.constant 2 : index
    %c0_48 = arith.constant 0 : index
    %c0_49 = arith.constant 0 : index
    %57 = vector.load %arg7[%c2_47, %c0_48, %c0_49] : memref<3x1x256xf32, #tpu.memory_space<vmem>>, vector<1x1x256xf32>
    %58 = vector.shape_cast %57 : vector<1x1x256xf32> to vector<1x256xf32>
    %cst_50 = arith.constant dense<0.000000e+00> : vector<8x256xf32>
    %59 = tpu.matmul %54, %56, %cst_50 {dimension_numbers = #tpu.dot_dimension_numbers<[1], [0], [0], [1], [0, 0, 1, 1], [], []>} : vector<8x256xf32>, vector<256x256xf32>, vector<8x256xf32> -> vector<8x256xf32>
    %60 = vector.broadcast %58 : vector<1x256xf32> to vector<8x256xf32>
    %61 = arith.addf %59, %60 : vector<8x256xf32>
    %62 = arith.addf %61, %45 : vector<8x256xf32>
    %cst_51 = arith.constant 0.000000e+00 : f32
    %63 = vector.broadcast %cst_51 : f32 to vector<8x256xf32>
    %64 = arith.maximumf %62, %63 : vector<8x256xf32>
    %c0_52 = arith.constant 0 : index
    %c0_53 = arith.constant 0 : index
    %65 = vector.load %arg8[%c0_52, %c0_53] : memref<256x256xf32, #tpu.memory_space<vmem>>, vector<256x256xf32>
    %c0_54 = arith.constant 0 : index
    %c0_55 = arith.constant 0 : index
    %66 = vector.load %arg9[%c0_54, %c0_55] : memref<1x256xf32, #tpu.memory_space<vmem>>, vector<1x256xf32>
    %cst_56 = arith.constant dense<0.000000e+00> : vector<8x256xf32>
    %67 = tpu.matmul %64, %65, %cst_56 {dimension_numbers = #tpu.dot_dimension_numbers<[1], [0], [0], [1], [0, 0, 1, 1], [], []>} : vector<8x256xf32>, vector<256x256xf32>, vector<8x256xf32> -> vector<8x256xf32>
    %68 = vector.broadcast %66 : vector<1x256xf32> to vector<8x256xf32>
    %69 = arith.addf %67, %68 : vector<8x256xf32>
    %c0_57 = arith.constant 0 : index
    %c0_58 = arith.constant 0 : index
    %70 = vector.load %arg10[%c0_57, %c0_58] : memref<256x128xf32, #tpu.memory_space<vmem>>, vector<256x128xf32>
    %c0_59 = arith.constant 0 : index
    %c0_60 = arith.constant 0 : index
    %71 = vector.load %arg11[%c0_59, %c0_60] : memref<1x128xf32, #tpu.memory_space<vmem>>, vector<1x128xf32>
    %cst_61 = arith.constant dense<0.000000e+00> : vector<8x128xf32>
    %72 = tpu.matmul %69, %70, %cst_61 {dimension_numbers = #tpu.dot_dimension_numbers<[1], [0], [0], [1], [0, 0, 1, 1], [], []>} : vector<8x256xf32>, vector<256x128xf32>, vector<8x128xf32> -> vector<8x128xf32>
    %73 = vector.broadcast %71 : vector<1x128xf32> to vector<8x128xf32>
    %74 = arith.addf %72, %73 : vector<8x128xf32>
    %cst_62 = arith.constant 0.000000e+00 : f32
    %75 = vector.broadcast %cst_62 : f32 to vector<8x128xf32>
    %76 = arith.maximumf %74, %75 : vector<8x128xf32>
    %c0_63 = arith.constant 0 : index
    %c0_64 = arith.constant 0 : index
    %77 = vector.load %arg12[%c0_63, %c0_64] : memref<128x192xf32, #tpu.memory_space<vmem>>, vector<128x192xf32>
    %c0_65 = arith.constant 0 : index
    %c0_66 = arith.constant 0 : index
    %78 = vector.load %arg13[%c0_65, %c0_66] : memref<1x192xf32, #tpu.memory_space<vmem>>, vector<1x192xf32>
    %cst_67 = arith.constant dense<0.000000e+00> : vector<8x192xf32>
    %79 = tpu.matmul %76, %77, %cst_67 {dimension_numbers = #tpu.dot_dimension_numbers<[1], [0], [0], [1], [0, 0, 1, 1], [], []>} : vector<8x128xf32>, vector<128x192xf32>, vector<8x192xf32> -> vector<8x192xf32>
    %80 = vector.broadcast %78 : vector<1x192xf32> to vector<8x192xf32>
    %81 = arith.addf %79, %80 : vector<8x192xf32>
    %c0_68 = arith.constant 0 : index
    %c0_69 = arith.constant 0 : index
    %82 = vector.load %arg14[%c0_68, %c0_69] : memref<8x192xf32, #tpu.memory_space<vmem>>, vector<8x192xf32>
    tpu.vector_store %arg14[%c0_68, %c0_69], %81 {strides = array<i32>} : memref<8x192xf32, #tpu.memory_space<vmem>>, vector<8x192xf32>,
    return
  }
  func.func @transform_0(%arg0: i32) -> (i32, i32) {
    %c0_i32 = arith.constant 0 : i32
    %c0_i32_0 = arith.constant 0 : i32
    return %arg0, %c0_i32 : i32, i32
  }
  func.func @transform_1(%arg0: i32) -> (i32, i32) {
    %c0_i32 = arith.constant 0 : i32
    %c0_i32_0 = arith.constant 0 : i32
    %c0_i32_1 = arith.constant 0 : i32
    return %c0_i32, %c0_i32_0 : i32, i32
  }
  func.func @transform_2(%arg0: i32) -> (i32, i32) {
    %c0_i32 = arith.constant 0 : i32
    %c0_i32_0 = arith.constant 0 : i32
    %c0_i32_1 = arith.constant 0 : i32
    return %c0_i32, %c0_i32_0 : i32, i32
  }
  func.func @transform_3(%arg0: i32) -> (i32, i32, i32) {
    %c0_i32 = arith.constant 0 : i32
    %c0_i32_0 = arith.constant 0 : i32
    %c0_i32_1 = arith.constant 0 : i32
    %c0_i32_2 = arith.constant 0 : i32
    return %c0_i32, %c0_i32_0, %c0_i32_1 : i32, i32, i32
  }
  func.func @transform_4(%arg0: i32) -> (i32, i32, i32) {
    %c0_i32 = arith.constant 0 : i32
    %c0_i32_0 = arith.constant 0 : i32
    %c0_i32_1 = arith.constant 0 : i32
    %c0_i32_2 = arith.constant 0 : i32
    return %c0_i32, %c0_i32_0, %c0_i32_1 : i32, i32, i32
  }
  func.func @transform_5(%arg0: i32) -> (i32, i32, i32) {
    %c0_i32 = arith.constant 0 : i32
    %c0_i32_0 = arith.constant 0 : i32
    %c0_i32_1 = arith.constant 0 : i32
    %c0_i32_2 = arith.constant 0 : i32
    return %c0_i32, %c0_i32_0, %c0_i32_1 : i32, i32, i32
  }
  func.func @transform_6(%arg0: i32) -> (i32, i32, i32) {
    %c0_i32 = arith.constant 0 : i32
    %c0_i32_0 = arith.constant 0 : i32
    %c0_i32_1 = arith.constant 0 : i32
    %c0_i32_2 = arith.constant 0 : i32
    return %c0_i32, %c0_i32_0, %c0_i32_1 : i32, i32, i32
  }
  func.func @transform_7(%arg0: i32) -> (i32, i32) {
    %c0_i32 = arith.constant 0 : i32
    %c0_i32_0 = arith.constant 0 : i32
    %c0_i32_1 = arith.constant 0 : i32
    return %c0_i32, %c0_i32_0 : i32, i32
  }
  func.func @transform_8(%arg0: i32) -> (i32, i32) {
    %c0_i32 = arith.constant 0 : i32
    %c0_i32_0 = arith.constant 0 : i32
    %c0_i32_1 = arith.constant 0 : i32
    return %c0_i32, %c0_i32_0 : i32, i32
  }
  func.func @transform_9(%arg0: i32) -> (i32, i32) {
    %c0_i32 = arith.constant 0 : i32
    %c0_i32_0 = arith.constant 0 : i32
    %c0_i32_1 = arith.constant 0 : i32
    return %c0_i32, %c0_i32_0 : i32, i32
  }
  func.func @transform_10(%arg0: i32) -> (i32, i32) {
    %c0_i32 = arith.constant 0 : i32
    %c0_i32_0 = arith.constant 0 : i32
    %c0_i32_1 = arith.constant 0 : i32
    return %c0_i32, %c0_i32_0 : i32, i32
  }
  func.func @transform_11(%arg0: i32) -> (i32, i32) {
    %c0_i32 = arith.constant 0 : i32
    %c0_i32_0 = arith.constant 0 : i32
    %c0_i32_1 = arith.constant 0 : i32
    return %c0_i32, %c0_i32_0 : i32, i32
  }
  func.func @transform_12(%arg0: i32) -> (i32, i32) {
    %c0_i32 = arith.constant 0 : i32
    %c0_i32_0 = arith.constant 0 : i32
    %c0_i32_1 = arith.constant 0 : i32
    return %c0_i32, %c0_i32_0 : i32, i32
  }
  func.func @transform_13(%arg0: i32) -> (i32, i32) {
    %c0_i32 = arith.constant 0 : i32
    %c0_i32_0 = arith.constant 0 : i32
    return %arg0, %c0_i32 : i32, i32
  }
}

</mosaic_0001>

<bundles_post_ra>
// kernel: tpu_custom_call.1
= control target key start
LH: loop header
LB: loop body
LE: loop exit
PB: predicated region body
PF: predicated region fallthrough
CT: control target
= control target key end

     0   :  { %s3489_s0 = inlined_call_operand.vmem [shape: f32[16,128], index: 0, kind: input, shape index: {}]   ;;  %s3490_s1 = inlined_call_operand.vmem [shape: f32[128,256], index: 1, kind: input, shape index: {}]   ;;  %s3491_s2 = inlined_call_operand.vmem [shape: f32[1,256], index: 2, kind: input, shape index: {}]   ;;  %s3492_s3 = inlined_call_operand.hbm [shape: f32[3,256,256], index: 3, kind: input, shape index: {}]   ;;  %s3493_s4 = inlined_call_operand.vmem [shape: f32[3,1,256], index: 4, kind: input, shape index: {}]   ;;  %s3494_s5 = inlined_call_operand.hbm [shape: f32[3,256,256], index: 5, kind: input, shape index: {}]   ;;  %s3495_s6 = inlined_call_operand.vmem [shape: f32[3,1,256], index: 6, kind: input, shape index: {}]   ;;  %s3496_s7 = inlined_call_operand.hbm [shape: f32[256,256], index: 7, kind: input, shape index: {}]   ;;  %s3497_s8 = inlined_call_operand.vmem [shape: f32[1,256], index: 8, kind: input, shape index: {}]   ;;  %s3498_s9 = inlined_call_operand.hbm [shape: f32[256,128], index: 9, kind: input, shape index: {}]   ;;  %s3499_s10 = inlined_call_operand.vmem [shape: f32[1,128], index: 10, kind: input, shape index: {}]   ;;  %s3500_s11 = inlined_call_operand.vmem [shape: f32[128,192], index: 11, kind: input, shape index: {}]   ;;  %s3501_s12 = inlined_call_operand.vmem [shape: f32[1,192], index: 12, kind: input, shape index: {}]   ;;  %s3502_s13 = inlined_call_operand.hbm [shape: f32[16,192], index: 13, kind: output, shape index: {}]  }
   0x1   :  { %3515 = sst [smem:[#allocation22_spill]] %s3501_s12 }
   0x2   :  { %3516 = sst [smem:[#allocation23_spill]] %s3502_s13 }
   0x3   :  { %18 = vsyncpa [#allocation3], 0 }
   0x4   :  { %19 = vsyncpa [#allocation6], 0 }
   0x5   :  { %20 = vsyncpa [#allocation9], 0 }
   0x6   :  { %21 = vsyncpa [#allocation4], 0 }
   0x7   :  { %23 = vsyncpa [#allocation4 + $0x1], 0  ;;  %s2968_s25 = smov 0   ;;  %s2970_s26 = smov 0  }
   0x8   :  { %s2972_s27 = smov 0   ;;  %s2974_s28 = smov 0  }
   0x9 LB: > { %3517 = sst [smem:[#allocation15_spill]] %s2874_s25  ;;  %s2989_s29 = sadd.s32 4294967295, %s2886_s28   ;;  %s2886_s28 = sphi %s2974_s28, %s3544_s28   ;;  %s2882_s27 = sphi %s2972_s27, %s3546_s27   ;;  %s2878_s26 = sphi %s2970_s26, %s3548_s26   ;;  %s2874_s25 = sphi %s2968_s25, %s3547_s25  }
   0xa   : > { %3518 = sst [smem:[#allocation16_spill]] %s2882_s27  ;;  %s2011_s30 = sadd.s32 4294967294, %s2886_s28  }
   0xb   : > { %3519 = sst [smem:[#allocation17_spill]] %s2886_s28  ;;  %s2993_s14 = sadd.s32 1, %s2886_s28  }
   0xc   : > { %3520 = sst [smem:[#allocation18_spill]] %s2993_s14  ;;  %s314_s15 = sadd.s32 1, %s2882_s27 }
   0xd   : > { %s311_s16 = ssub.s32 %s2886_s28, %s2993_s14  ;;  %p324_p0 = scmp.ne.s32.totalorder %s2882_s27, %s2878_s26 }
   0xe   : > { %p312_p1 = scmp.eq.s32.totalorder %s311_s16, 0  ;;  %p325_p2 = scmp.eq.s32.totalorder %s2989_s29, 1 }
   0xf   : > { %p330_p3 = scmp.ne.s32.totalorder %s2878_s26, %s2874_s25  ;;  %p331_p4 = scmp.eq.s32.totalorder %s2011_s30, 1 }
  0x10   : > { %s3004_s17 = scalar_select %p312_p1, %s2882_s27, %s314_s15  }
  0x11   : > { %p3006_p5 = por %p325_p2, %p324_p0  ;;  %p3010_p6 = por %p331_p4, %p330_p3 }
  0x12   : > { %3521 = sst [smem:[#allocation19_spill]] %s3004_s17  ;;  %p2012_p7 = scmp.ge.s32.totalorder %s2886_s28, 1 }
  0x13   : > { %s3522_s18 = scalar_select %p3006_p5, 1, 0 }
  0x14   : > { %s3524_s19 = scalar_select %p3010_p6, 1, 0 }
  0x15   : > { %3523 = sst [smem:[#allocation20_spill]] %s3522_s18  ;;  %p338_p8 = scmp.lt.s32.totalorder %s2886_s28, 3 }
  0x16   : > { %3525 = sst [smem:[#allocation21_spill]] %s3524_s19  ;;  %p3508_p9 = scmp.eq.s32.totalorder %s2989_s29, 0 }
  0x17   : > { %p3017_p10 = pnand %p2012_p7, %p338_p8  ;;  %s2888_s21 = smov [#allocation5]  }
  0x18   : > { %s372_s22 = sshll.u32 %s2888_s21, 4  ;;  %s2889_s24 = smov [#allocation2]   ;;  %s3023_s22 = int_to_ptr.vmem [resolvable:$true] %s372_s22 }
  0x19   : > { %s3526_s20 = scalar_select %p3017_p10, 1, 0 }
  0x1a   : > { %p2633_p11 = pneg %p3017_p10  ;;  %s356_s30 = sshll.u32 %s2889_s24, 4  ;;  %s3031_s30 = int_to_ptr.vmem [resolvable:$true] %s356_s30 }
  0x1b   : > { %s2890_s15 = smov [#allocation7]   ;;  %s2700_s14 = scalar_lea.hbm %s3494_s5, 24576 }
  0x1c   : > { %p3027_p12 = pnand %p3508_p9, %p2633_p11  ;;  %s3033_s16 = sshll.u32 %s2890_s15, 4  ;;  %s389_s16 = int_to_ptr.vmem [resolvable:$true] %s3033_s16 }
  0x1d   : > { %p2701_p13 = scmp.ne.s32.totalorder %s3494_s5, %s2700_s14  ;;  %p2707_p3 = scmp.lt.u32.totalorder %s2700_s14, %s3494_s5 }
  0x1e   : > { %p3043_p0 = pneg %p3027_p12 }
  0x20   : > { %p2703_p1 = pnand %p3043_p0, %p2701_p13 }
  0x22   : > { %p2704_p2 = pneg %p2703_p1 }
  0x24   : > { %p2709_p4 = pnand %p2707_p3, %p2704_p2 }
  0x26   : > { %2712 = shalt.err (!%p2709_p4)
}
  0x27   : > { %s2713_s27 = scalar_lea.vmem %s3023_s22, 24576  ;;  %p2721_p9 = scmp.lt.s32.totalorder %s3023_s22, %s3023_s22 }
  0x28   : > { %p2714_p7 = scmp.ne.s32.totalorder %s3023_s22, %s2713_s27  ;;  %p2722_p6 = scmp.lt.s32.totalorder %s2713_s27, %s2713_s27 }
  0x2a   : > { %p2716_p8 = pnand %p2714_p7, %p3043_p0  ;;  %p2723_p13 = por %p2722_p6, %p2721_p9 }
  0x2c   : > { %p2717_p11 = pneg %p2716_p8 }
  0x2e   : > { %p2724_p1 = pnand %p2723_p13, %p2717_p11 }
  0x30   : > { %2727 = shalt.err (!%p2724_p1)
}
  0x31   : > { %s2891_s17 = smov 256   ;;  %s2892_s14 = smov 16  }
  0x32   : > { %2639 = dma.hbm_to_vmem [thread:$0]  (!%p3027_p12), %s3494_s5, 24576, %s3023_s22, [#allocation6], %s2891_s17, %s2891_s17, %s2892_s14  }
  0x33   : > { %s2728_s27 = scalar_lea.hbm %s3492_s3, 24576 }
  0x34   : > { %p2729_p6 = scmp.ne.s32.totalorder %s3492_s3, %s2728_s27  ;;  %p2735_p3 = scmp.lt.u32.totalorder %s2728_s27, %s3492_s3 }
  0x36   : > { %p2731_p9 = pnand %p2729_p6, %p3043_p0 }
  0x38   : > { %p2732_p2 = pneg %p2731_p9 }
  0x3a   : > { %p2737_p4 = pnand %p2735_p3, %p2732_p2 }
  0x3c   : > { %2740 = shalt.err (!%p2737_p4)
}
  0x3d   : > { %s2741_s22 = scalar_lea.vmem %s3031_s30, 24576  ;;  %p2749_p13 = scmp.lt.s32.totalorder %s3031_s30, %s3031_s30 }
  0x3e   : > { %p2742_p7 = scmp.ne.s32.totalorder %s3031_s30, %s2741_s22  ;;  %p2750_p1 = scmp.lt.s32.totalorder %s2741_s22, %s2741_s22 }
  0x40   : > { %p2744_p8 = pnand %p2742_p7, %p3043_p0  ;;  %p2751_p6 = por %p2750_p1, %p2749_p13 }
  0x42   : > { %p2745_p11 = pneg %p2744_p8 }
  0x44   : > { %p2752_p9 = pnand %p2751_p6, %p2745_p11 }
  0x46   : > { %2755 = shalt.err (!%p2752_p9)
}
  0x47   : > { %2636 = dma.hbm_to_vmem [thread:$0]  (!%p3027_p12), %s3492_s3, 24576, %s3031_s30, [#allocation3], %s2891_s17, %s2891_s17, %s2892_s14  }
  0x48   : > { %s2756_s19 = scalar_lea.hbm %s3496_s7, 8192 }
  0x49   : > { %p2757_p2 = scmp.ne.s32.totalorder %s3496_s7, %s2756_s19  ;;  %p2763_p7 = scmp.lt.u32.totalorder %s2756_s19, %s3496_s7 }
  0x4b   : > { %p2759_p3 = pnand %p2757_p2, %p3043_p0 }
  0x4d   : > { %p2760_p4 = pneg %p2759_p3 }
  0x4f   : > { %p2765_p8 = pnand %p2763_p7, %p2760_p4 }
  0x51   : > { %2768 = shalt.err (!%p2765_p8)
}
  0x52   : > { %s2769_s22 = scalar_lea.vmem %s389_s16, 8192  ;;  %p2777_p6 = scmp.lt.s32.totalorder %s389_s16, %s389_s16 }
  0x53   : > { %p2770_p11 = scmp.ne.s32.totalorder %s389_s16, %s2769_s22  ;;  %p2778_p9 = scmp.lt.s32.totalorder %s2769_s22, %s2769_s22 }
  0x55   : > { %p2772_p13 = pnand %p2770_p11, %p3043_p0  ;;  %p2779_p5 = por %p2778_p9, %p2777_p6 }
  0x57   : > { %p2773_p1 = pneg %p2772_p13 }
  0x59   : > { %p2780_p10 = pnand %p2779_p5, %p2773_p1 }
  0x5b   : > { %2783 = shalt.err (!%p2780_p10)
}
  0x5c   : > { %2642 = dma.hbm_to_vmem [thread:$0]  (!%p3027_p12), %s3496_s7, 8192, %s389_s16, [#allocation6], %s2891_s17, %s2891_s17, %s2892_s14  }
  0x5d   : > { %s2893_s13 = smov [#allocation8]   ;;  %s2784_s21 = scalar_lea.hbm %s3498_s9, 4096 }
  0x5e   : > { %s404_s28 = sshll.u32 %s2893_s13, 4  ;;  %p2785_p5 = scmp.ne.s32.totalorder %s3498_s9, %s2784_s21  ;;  %s405_s28 = int_to_ptr.vmem [resolvable:$true] %s404_s28 }
  0x5f   : > { %p2791_p3 = scmp.lt.u32.totalorder %s2784_s21, %s3498_s9 }
  0x60   : > { %p2787_p10 = pnand %p2785_p5, %p3043_p0 }
  0x62   : > { %p2788_p2 = pneg %p2787_p10 }
  0x64   : > { %p2793_p4 = pnand %p2791_p3, %p2788_p2 }
  0x66   : > { %2796 = shalt.err (!%p2793_p4)
}
  0x67   : > { %s2797_s16 = scalar_lea.vmem %s405_s28, 4096  ;;  %p2805_p13 = scmp.lt.s32.totalorder %s405_s28, %s405_s28 }
  0x68   : > { %p2798_p7 = scmp.ne.s32.totalorder %s405_s28, %s2797_s16  ;;  %p2806_p1 = scmp.lt.s32.totalorder %s2797_s16, %s2797_s16 }
  0x6a   : > { %p2800_p8 = pnand %p2798_p7, %p3043_p0  ;;  %p2807_p6 = por %p2806_p1, %p2805_p13 }
  0x6c   : > { %p2801_p11 = pneg %p2800_p8 }
  0x6e   : > { %p2808_p9 = pnand %p2807_p6, %p2801_p11 }
  0x70   : > { %2811 = shalt.err (!%p2808_p9)
}
  0x71   : > { %s2894_s17 = smov 128   ;;  %s2895_s14 = smov 8  }
  0x72   : > { %2645 = dma.hbm_to_vmem [thread:$0]  (!%p3027_p12), %s3498_s9, 4096, %s405_s28, [#allocation9], %s2894_s17, %s2894_s17, %s2895_s14  }
  0x73   : > { %p3529_p5 = scmp.ne.s32.totalorder %s3526_s20, 0 }
  0x74   : > { %p3530_p10 = scmp.eq.s32.totalorder (!%p3529_p5), %s2989_s29, 0 }
  0x75   : > { %436 = sbr.rel (%p3529_p5) target bundleno = 2363 (0x93b), region = 72 }
  0x7c   : > { %2857 = dma.done.wait (%p3530_p10), [#allocation3], 24576   ;;  %p3531_p0 = pmov %p3530_p10 }
  0x7e   : > { %2859 = vsyncadd (%p3531_p0), [#allocation3], 4294942720  ;;  %p3532_p2 = pmov %p3531_p0 }
  0x7f   : > { %p3533_p3 = pmov %p3531_p0 }
  0x80   : > { %2861 = dma.done.wait (%p3532_p2), [#allocation6], 32768  }
  0x81   : > { %2863 = vsyncadd (%p3533_p3), [#allocation6], 4294934528  ;;  %p3534_p4 = pmov %p3531_p0 }
  0x82   : > { %p3535_p12 = pmov %p3531_p0 }
  0x83   : > { %2865 = dma.done.wait (%p3534_p4), [#allocation9], 4096  }
  0x84   : > { %2867 = vsyncadd (%p3535_p12), [#allocation9], 4294963200  ;;  %v2896_v0 = vmov 0.0   ;;  %v497_v1 = vld [vmem:[%s3490_s1 + $0x8] sm:$0xff]  ;;  %v499_v2 = vld [vmem:[%s3490_s1 + $0x18] sm:$0xff]  ;;  %p491_p7 = scmp.lt.s32.totalorder %s2989_s29, 1 }
  0x85   : > { %604 = vmatprep.mubr.f32.mxu0 %v2896_v0  ;;  %v496_v3 = vld [vmem:[%s3490_s1] sm:$0xff]  ;;  %v2071_v4 = vpack.c.bf16 %v499_v2, %v497_v1  ;;  %v498_v5 = vld [vmem:[%s3490_s1 + $0x10] sm:$0xff]  ;;  %v501_v6 = vld [vmem:[%s3490_s1 + $0x28] sm:$0xff]  ;;  %s488_s30 = sand.u32 1, %s2878_s26   ;;  %s3536_s23 = sld [smem:[#allocation22_spill]]  ;;  %vm1894_vm0 = vcmask 523264  }
  0x86   : > { %v503_v7 = vld [vmem:[%s3490_s1 + $0x38] sm:$0xff]  ;;  %v2073_v8 = vpack.c.bf16 %v498_v5, %v496_v3  ;;  %v500_v10 = vld [vmem:[%s3490_s1 + $0x20] sm:$0xff]  ;;  %v502_v11 = vld [vmem:[%s3490_s1 + $0x30] sm:$0xff]  ;;  %s492_s15 = scalar_select %p491_p7, %s2989_s29, 1 }
  0x87   : > { %v2075_v9 = vpack.c.bf16 %v503_v7, %v501_v6  ;;  %v505_v12 = vld [vmem:[%s3490_s1 + $0x48] sm:$0xff]  ;;  %2072 = vmatprep.subr.bf16.mxu0 %v2071_v4  ;;  %v507_v13 = vld [vmem:[%s3490_s1 + $0x58] sm:$0xff]  ;;  %v2077_v14 = vpack.c.bf16 %v502_v11, %v500_v10  ;;  %v504_v16 = vld [vmem:[%s3490_s1 + $0x40] sm:$0xff]  ;;  %s2023_s12 = sshll.u32 %s488_s30, 4  ;;  %s3537_s13 = sld [smem:[#allocation20_spill]] }
  0x88   : > { %2074 = vmatpush1.bf16.msra.mxu0 %v2073_v8  ;;  %v2079_v15 = vpack.c.bf16 %v507_v13, %v505_v12  ;;  %v506_v17 = vld [vmem:[%s3490_s1 + $0x50] sm:$0xff]  ;;  %v509_v18 = vld [vmem:[%s3490_s1 + $0x68] sm:$0xff]  ;;  %v511_v19 = vld [vmem:[%s3490_s1 + $0x78] sm:$0xff]  ;;  %s2024_s14 = sshll.u32 %s492_s15, 3  ;;  %s2035_s28 = sshll.u32 %s2989_s29, 8 }
  0x89   : > { %2076 = vmatprep.subr.bf16.mxu0 %v2075_v9  ;;  %v2081_v20 = vpack.c.bf16 %v506_v17, %v504_v16  ;;  %v2083_v21 = vpack.c.bf16 %v511_v19, %v509_v18  ;;  %v508_v22 = vld [vmem:[%s3490_s1 + $0x60] sm:$0xff]  ;;  %v510_v23 = vld [vmem:[%s3490_s1 + $0x70] sm:$0xff]  ;;  %v513_v24 = vld [vmem:[%s3490_s1 + $0x88] sm:$0xff]  ;;  %s494_s25 = scalar_lea.vmem %s3489_s0, %s2024_s14  ;;  %s490_s18 = scalar_lea.vmem [#allocation10], %s2023_s12 }
  0x8a   : > { %v515_v25 = vld [vmem:[%s3490_s1 + $0x98] sm:$0xff]  ;;  %v512_v26 = vld [vmem:[%s3490_s1 + $0x80] sm:$0xff]  ;;  %v514_v27 = vld [vmem:[%s3490_s1 + $0x90] sm:$0xff]  ;;  %v2085_v31 = vpack.c.bf16 %v510_v23, %v508_v22  ;;  %s1911_s19 = sshll.u32 %s490_s18, 4  ;;  %s3538_s15 = sld [smem:[#allocation23_spill]]  ;;  %s3449_s19 = int_to_ptr.vmem [resolvable:$true] %s1911_s19 }
  0x8b   : > { %v614_v28 = vld [vmem:[#allocation2 + $0x8] sm:$0xff]  ;;  %v616_v29 = vld [vmem:[#allocation2 + $0x18] sm:$0xff]  ;;  %v613_v30 = vld [vmem:[#allocation2] sm:$0xff]  ;;  %v2087_v36 = vpack.c.bf16 %v515_v25, %v513_v24  ;;  %v2089_v46 = vpack.c.bf16 %v514_v27, %v512_v26  ;;  %s1897_s29 = scalar_lea.sflag [#allocation4], %s488_s30  ;;  %s2812_s22 = scalar_lea.vmem %s3449_s19, 256 }
  0x8c   : > { %2078 = vmatpush1.bf16.msra.mxu0 %v2077_v14  ;;  %v2103_v32 = vpack.c.bf16 %v616_v29, %v614_v28  ;;  %v615_v33 = vld [vmem:[#allocation2 + $0x10] sm:$0xff]  ;;  %v618_v34 = vld [vmem:[#allocation2 + $0x28] sm:$0xff]  ;;  %v620_v35 = vld [vmem:[#allocation2 + $0x38] sm:$0xff]  ;;  %p2813_p8 = scmp.ne.s32.totalorder %s3449_s19, %s2812_s22  ;;  %s2897_s16 = smov [#allocation10]  }
  0x8d   : > { %2080 = vmatprep.subr.bf16.mxu0 %v2079_v15  ;;  %v2105_v37 = vpack.c.bf16 %v615_v33, %v613_v30  ;;  %v2107_v38 = vpack.c.bf16 %v620_v35, %v618_v34  ;;  %v617_v39 = vld [vmem:[#allocation2 + $0x20] sm:$0xff]  ;;  %v619_v40 = vld [vmem:[#allocation2 + $0x30] sm:$0xff]  ;;  %v622_v41 = vld [vmem:[#allocation2 + $0x48] sm:$0xff]  ;;  %p3539_p11 = scmp.ne.s32.totalorder %s3537_s13, 0  ;;  %s2816_s17 = sshll.u32 %s2897_s16, 4  ;;  %s2817_s17 = int_to_ptr.vmem [resolvable:$false] %s2816_s17 }
  0x8e   : > { %v517_v42 = vld [vmem:[%s3490_s1 + $0xa8] sm:$0xff]  ;;  %v519_v43 = vld [vmem:[%s3490_s1 + $0xb8] sm:$0xff]  ;;  %2104 = vmatprep.subr.bf16.mxu1 %v2103_v32  ;;  %v2109_v45 = vpack.c.bf16 %v619_v40, %v617_v39  ;;  %v516_v47 = vld [vmem:[%s3490_s1 + $0xa0] sm:$0xff]  ;;  %s2818_s14 = scalar_lea.vmem %s2817_s17, 512  ;;  %p2819_p6 = scmp.lt.s32.totalorder %s3449_s19, %s2817_s17 }
  0x8f   : > { %v624_v44 = vld [vmem:[#allocation2 + $0x58] sm:$0xff]  ;;  %2106 = vmatpush1.bf16.msra.mxu1 %v2105_v37  ;;  %v621_v49 = vld [vmem:[#allocation2 + $0x40] sm:$0xff]  ;;  %v623_v50 = vld [vmem:[#allocation2 + $0x50] sm:$0xff]  ;;  %v2091_v51 = vpack.c.bf16 %v519_v43, %v517_v42  ;;  %p2814_p13 = pnand %p2813_p8, %p3539_p11  ;;  %p2820_p9 = scmp.lt.s32.totalorder %s2818_s14, %s2812_s22 }
  0x90   : > { %2082 = vmatpush1.bf16.msra.mxu0 %v2081_v20  ;;  %2108 = vmatprep.subr.bf16.mxu1 %v2107_v38  ;;  %v2111_v48 = vpack.c.bf16 %v624_v44, %v622_v41  ;;  %v518_v52 = vld [vmem:[%s3490_s1 + $0xb0] sm:$0xff]  ;;  %v626_v53 = vld [vmem:[#allocation2 + $0x68] sm:$0xff]  ;;  %v628_v54 = vld [vmem:[#allocation2 + $0x78] sm:$0xff]  ;;  %v2113_v57 = vpack.c.bf16 %v623_v50, %v621_v49  ;;  %s3447_s27 = scalar_lea.hbm %s3538_s15, %s2035_s28 }
  0x91   : > { %2084 = vmatprep.subr.bf16.mxu0 %v2083_v21  ;;  %v521_v55 = vld [vmem:[%s3490_s1 + $0xc8] sm:$0xff]  ;;  %v523_v56 = vld [vmem:[%s3490_s1 + $0xd8] sm:$0xff]  ;;  %v2093_v58 = vpack.c.bf16 %v518_v52, %v516_v47  ;;  %v520_v59 = vld [vmem:[%s3490_s1 + $0xc0] sm:$0xff]  ;;  %v2115_v60 = vpack.c.bf16 %v628_v54, %v626_v53  ;;  %p2815_p1 = pneg %p2814_p13  ;;  %p2821_p5 = por %p2820_p9, %p2819_p6 }
  0x92   : > { %v625_v61 = vld [vmem:[#allocation2 + $0x60] sm:$0xff]  ;;  %v627_v62 = vld [vmem:[#allocation2 + $0x70] sm:$0xff]  ;;  %v2095_v63 = vpack.c.bf16 %v523_v56, %v521_v55  ;;  %v630_v2 = vld [vmem:[#allocation2 + $0x88] sm:$0xff] }
  0x93   : > { %2110 = vmatpush1.bf16.msra.mxu1 %v2109_v45  ;;  %v522_v1 = vld [vmem:[%s3490_s1 + $0xd0] sm:$0xff]  ;;  %v632_v3 = vld [vmem:[#allocation2 + $0x98] sm:$0xff]  ;;  %v525_v4 = vld [vmem:[%s3490_s1 + $0xe8] sm:$0xff]  ;;  %v2117_v6 = vpack.c.bf16 %v627_v62, %v625_v61  ;;  %p2822_p10 = pnand %p2821_p5, %p2815_p1 }
  0x94   : > { %2086 = vmatpush1.bf16.msra.mxu0 %v2085_v31  ;;  %2112 = vmatprep.subr.bf16.mxu1 %v2111_v48  ;;  %v527_v5 = vld [vmem:[%s3490_s1 + $0xf8] sm:$0xff]  ;;  %v2097_v7 = vpack.c.bf16 %v522_v1, %v520_v59  ;;  %v524_v8 = vld [vmem:[%s3490_s1 + $0xe0] sm:$0xff]  ;;  %v2119_v9 = vpack.c.bf16 %v632_v3, %v630_v2  ;;  %v631_v11 = vld [vmem:[#allocation2 + $0x90] sm:$0xff] }
  0x95   : > { %2088 = vmatprep.subr.bf16.mxu0 %v2087_v36  ;;  %v629_v10 = vld [vmem:[#allocation2 + $0x80] sm:$0xff]  ;;  %v2099_v12 = vpack.c.bf16 %v527_v5, %v525_v4  ;;  %v526_v13 = vld [vmem:[%s3490_s1 + $0xf0] sm:$0xff]  ;;  %v634_v14 = vld [vmem:[#allocation2 + $0xa8] sm:$0xff] }
  0x96   : > { %v636_v15 = vld [vmem:[#allocation2 + $0xb8] sm:$0xff]  ;;  %v2121_v16 = vpack.c.bf16 %v631_v11, %v629_v10  ;;  %v2101_v17 = vpack.c.bf16 %v526_v13, %v524_v8  ;;  %v633_v19 = vld [vmem:[#allocation2 + $0xa0] sm:$0xff]  ;;  %v635_v20 = vld [vmem:[#allocation2 + $0xb0] sm:$0xff] }
  0x97   : > { %2114 = vmatpush1.bf16.msra.mxu1 %v2113_v57  ;;  %v2123_v18 = vpack.c.bf16 %v636_v15, %v634_v14  ;;  %v638_v21 = vld [vmem:[#allocation2 + $0xc8] sm:$0xff]  ;;  %v640_v22 = vld [vmem:[#allocation2 + $0xd8] sm:$0xff]  ;;  %v2125_v23 = vpack.c.bf16 %v635_v20, %v633_v19  ;;  %v495_v24 = vld [vmem:[%s494_s25] sm:$0xff] }
  0x98   : > { %2090 = vmatpush1.bf16.msra.mxu0 %v2089_v46  ;;  %2116 = vmatprep.subr.bf16.mxu1 %v2115_v60  ;;  %v2127_v25 = vpack.c.bf16 %v640_v22, %v638_v21  ;;  %v637_v26 = vld [vmem:[#allocation2 + $0xc0] sm:$0xff]  ;;  %v639_v27 = vld [vmem:[#allocation2 + $0xd0] sm:$0xff]  ;;  %v642_v28 = vld [vmem:[#allocation2 + $0xe8] sm:$0xff] }
  0x99   : > { %2092 = vmatprep.subr.bf16.mxu0 %v2091_v51  ;;  %v644_v29 = vld [vmem:[#allocation2 + $0xf8] sm:$0xff]  ;;  %v2129_v30 = vpack.c.bf16 %v639_v27, %v637_v26  ;;  %v641_v32 = vld [vmem:[#allocation2 + $0xe0] sm:$0xff]  ;;  %v643_v33 = vld [vmem:[#allocation2 + $0xf0] sm:$0xff] }
  0x9a   : > { %v2131_v31 = vpack.c.bf16 %v644_v29, %v642_v28  ;;  %v646_v34 = vld [vmem:[#allocation2 + $0x108] sm:$0xff]  ;;  %v648_v35 = vld [vmem:[#allocation2 + $0x118] sm:$0xff]  ;;  %v2133_v36 = vpack.c.bf16 %v643_v33, %v641_v32  ;;  %v645_v38 = vld [vmem:[#allocation2 + $0x100] sm:$0xff] }
  0x9b   : > { %2118 = vmatpush1.bf16.msra.mxu1 %v2117_v6  ;;  %v2135_v37 = vpack.c.bf16 %v648_v35, %v646_v34  ;;  %v647_v39 = vld [vmem:[#allocation2 + $0x110] sm:$0xff]  ;;  %v650_v40 = vld [vmem:[#allocation2 + $0x128] sm:$0xff]  ;;  %v652_v41 = vld [vmem:[#allocation2 + $0x138] sm:$0xff] }
  0x9c   : > { %2094 = vmatpush1.bf16.msra.mxu0 %v2093_v58  ;;  %2120 = vmatprep.subr.bf16.mxu1 %v2119_v9  ;;  %v2137_v42 = vpack.c.bf16 %v647_v39, %v645_v38  ;;  %v2139_v43 = vpack.c.bf16 %v652_v41, %v650_v40  ;;  %v649_v44 = vld [vmem:[#allocation2 + $0x120] sm:$0xff]  ;;  %v651_v45 = vld [vmem:[#allocation2 + $0x130] sm:$0xff]  ;;  %v654_v46 = vld [vmem:[#allocation2 + $0x148] sm:$0xff] }
  0x9d   : > { %2096 = vmatprep.subr.bf16.mxu0 %v2095_v63  ;;  %v656_v47 = vld [vmem:[#allocation2 + $0x158] sm:$0xff]  ;;  %v2141_v48 = vpack.c.bf16 %v651_v45, %v649_v44  ;;  %v653_v50 = vld [vmem:[#allocation2 + $0x140] sm:$0xff]  ;;  %v655_v51 = vld [vmem:[#allocation2 + $0x150] sm:$0xff] }
  0x9e   : > { %v2143_v49 = vpack.c.bf16 %v656_v47, %v654_v46  ;;  %v658_v52 = vld [vmem:[#allocation2 + $0x168] sm:$0xff]  ;;  %v660_v53 = vld [vmem:[#allocation2 + $0x178] sm:$0xff]  ;;  %v2145_v54 = vpack.c.bf16 %v655_v51, %v653_v50  ;;  %v657_v56 = vld [vmem:[#allocation2 + $0x160] sm:$0xff] }
  0x9f   : > { %2122 = vmatpush1.bf16.msra.mxu1 %v2121_v16  ;;  %v2147_v55 = vpack.c.bf16 %v660_v53, %v658_v52  ;;  %v659_v57 = vld [vmem:[#allocation2 + $0x170] sm:$0xff]  ;;  %v662_v58 = vld [vmem:[#allocation2 + $0x188] sm:$0xff]  ;;  %v664_v59 = vld [vmem:[#allocation2 + $0x198] sm:$0xff] }
  0xa0   : > { %2098 = vmatpush1.bf16.msra.mxu0 %v2097_v7  ;;  %2124 = vmatprep.subr.bf16.mxu1 %v2123_v18  ;;  %v2149_v60 = vpack.c.bf16 %v659_v57, %v657_v56  ;;  %v2151_v61 = vpack.c.bf16 %v664_v59, %v662_v58  ;;  %v661_v62 = vld [vmem:[#allocation2 + $0x180] sm:$0xff]  ;;  %v663_v63 = vld [vmem:[#allocation2 + $0x190] sm:$0xff]  ;;  %v666_v1 = vld [vmem:[#allocation2 + $0x1a8] sm:$0xff] }
  0xa1   : > { %2100 = vmatprep.subr.bf16.mxu0 %v2099_v12  ;;  %v668_v2 = vld [vmem:[#allocation2 + $0x1b8] sm:$0xff]  ;;  %v2153_v3 = vpack.c.bf16 %v663_v63, %v661_v62  ;;  %v665_v5 = vld [vmem:[#allocation2 + $0x1a0] sm:$0xff]  ;;  %v667_v6 = vld [vmem:[#allocation2 + $0x1b0] sm:$0xff] }
  0xa2   : > { %v2155_v4 = vpack.c.bf16 %v668_v2, %v666_v1  ;;  %v670_v7 = vld [vmem:[#allocation2 + $0x1c8] sm:$0xff]  ;;  %v672_v8 = vld [vmem:[#allocation2 + $0x1d8] sm:$0xff]  ;;  %v2157_v9 = vpack.c.bf16 %v667_v6, %v665_v5  ;;  %v669_v11 = vld [vmem:[#allocation2 + $0x1c0] sm:$0xff] }
  0xa3   : > { %2126 = vmatpush1.bf16.msra.mxu1 %v2125_v23  ;;  %v2159_v10 = vpack.c.bf16 %v672_v8, %v670_v7  ;;  %v671_v12 = vld [vmem:[#allocation2 + $0x1d0] sm:$0xff]  ;;  %v674_v14 = vld [vmem:[#allocation2 + $0x1e8] sm:$0xff]  ;;  %v676_v15 = vld [vmem:[#allocation2 + $0x1f8] sm:$0xff] }
  0xa4   : > { %2102 = vmatpush1.bf16.msra.mxu0 %v2101_v17  ;;  %2128 = vmatprep.subr.bf16.mxu1 %v2127_v25  ;;  %v2161_v13 = vpack.c.bf16 %v671_v12, %v669_v11  ;;  %v2163_v16 = vpack.c.bf16 %v676_v15, %v674_v14  ;;  %v673_v17 = vld [vmem:[#allocation2 + $0x1e0] sm:$0xff]  ;;  %v675_v18 = vld [vmem:[#allocation2 + $0x1f0] sm:$0xff]  ;;  %v763_v20 = vld [vmem:[#allocation5 + $0x8] sm:$0xff] }
  0xa5   : > { %v2165_v19 = vpack.c.bf16 %v675_v18, %v673_v17  ;;  %v765_v21 = vld [vmem:[#allocation5 + $0x18] sm:$0xff]  ;;  %v762_v22 = vld [vmem:[#allocation5] sm:$0xff]  ;;  %v767_v25 = vld [vmem:[#allocation5 + $0x28] sm:$0xff] }
  0xa6   : > { %v2167_v23 = vpack.c.bf16 %v765_v21, %v763_v20  ;;  %v769_v26 = vld [vmem:[#allocation5 + $0x38] sm:$0xff]  ;;  %v766_v29 = vld [vmem:[#allocation5 + $0x20] sm:$0xff]  ;;  %v800_v15 = vld [vmem:[#allocation5 + $0x130] sm:$0xff] }
  0xa7   : > { %605 = vmatmul.mubr.f32.vlgmr.msra.gmra.mrb[0].mxu0 %v495_v24  ;;  %2130 = vmatpush1.bf16.msra.mxu1 %v2129_v30  ;;  %v764_v24 = vld [vmem:[#allocation5 + $0x10] sm:$0xff]  ;;  %v2171_v28 = vpack.c.bf16 %v769_v26, %v767_v25  ;;  %v773_v32 = vld [vmem:[#allocation5 + $0x58] sm:$0xff]  ;;  %v770_v35 = vld [vmem:[#allocation5 + $0x40] sm:$0xff] }
  0xa8   : > { %2132 = vmatprep.subr.bf16.mxu1 %v2131_v31  ;;  %v2169_v27 = vpack.c.bf16 %v764_v24, %v762_v22  ;;  %v768_v30 = vld [vmem:[#allocation5 + $0x30] sm:$0xff]  ;;  %v771_v31 = vld [vmem:[#allocation5 + $0x48] sm:$0xff]  ;;  %2168 = vmatprep.subr.bf16.mxu0 %v2167_v23  ;;  %v777_v38 = vld [vmem:[#allocation5 + $0x78] sm:$0xff] }
  0xa9   : > { %v2173_v33 = vpack.c.bf16 %v768_v30, %v766_v29  ;;  %v2175_v34 = vpack.c.bf16 %v773_v32, %v771_v31  ;;  %v774_v41 = vld [vmem:[#allocation5 + $0x60] sm:$0xff]  ;;  %v781_v44 = vld [vmem:[#allocation5 + $0x98] sm:$0xff]  ;;  %v804_v21 = vld [vmem:[#allocation5 + $0x150] sm:$0xff] }
  0xaa   : > { %2170 = vmatpush1.bf16.msra.mxu0 %v2169_v27  ;;  %v778_v47 = vld [vmem:[#allocation5 + $0x80] sm:$0xff]  ;;  %v785_v50 = vld [vmem:[#allocation5 + $0xb8] sm:$0xff]  ;;  %v807_v22 = vld [vmem:[#allocation5 + $0x168] sm:$0xff] }
  0xab   : > { %2134 = vmatpush1.bf16.msra.mxu1 %v2133_v36  ;;  %2172 = vmatprep.subr.bf16.mxu0 %v2171_v28  ;;  %v772_v36 = vld [vmem:[#allocation5 + $0x50] sm:$0xff]  ;;  %v782_v53 = vld [vmem:[#allocation5 + $0xa0] sm:$0xff]  ;;  %v789_v56 = vld [vmem:[#allocation5 + $0xd8] sm:$0xff] }
  0xac   : > { %2136 = vmatprep.subr.bf16.mxu1 %v2135_v37  ;;  %v775_v37 = vld [vmem:[#allocation5 + $0x68] sm:$0xff]  ;;  %v2177_v39 = vpack.c.bf16 %v772_v36, %v770_v35  ;;  %v786_v59 = vld [vmem:[#allocation5 + $0xc0] sm:$0xff]  ;;  %v793_v62 = vld [vmem:[#allocation5 + $0xf8] sm:$0xff] }
  0xad   : > { %v2179_v40 = vpack.c.bf16 %v777_v38, %v775_v37  ;;  %v790_v2 = vld [vmem:[#allocation5 + $0xe0] sm:$0xff]  ;;  %v797_v5 = vld [vmem:[#allocation5 + $0x118] sm:$0xff]  ;;  %v808_v27 = vld [vmem:[#allocation5 + $0x170] sm:$0xff] }
  0xae   : > { %2174 = vmatpush1.bf16.msra.mxu0 %v2173_v33  ;;  %v794_v8 = vld [vmem:[#allocation5 + $0x100] sm:$0xff]  ;;  %v801_v11 = vld [vmem:[#allocation5 + $0x138] sm:$0xff]  ;;  %v811_v28 = vld [vmem:[#allocation5 + $0x188] sm:$0xff] }
  0xaf   : > { %2138 = vmatpush1.bf16.msra.mxu1 %v2137_v42  ;;  %2176 = vmatprep.subr.bf16.mxu0 %v2175_v34  ;;  %v776_v42 = vld [vmem:[#allocation5 + $0x70] sm:$0xff]  ;;  %v798_v14 = vld [vmem:[#allocation5 + $0x120] sm:$0xff]  ;;  %v805_v17 = vld [vmem:[#allocation5 + $0x158] sm:$0xff] }
  0xb0   : > { %2140 = vmatprep.subr.bf16.mxu1 %v2139_v43  ;;  %v779_v43 = vld [vmem:[#allocation5 + $0x88] sm:$0xff]  ;;  %v2181_v45 = vpack.c.bf16 %v776_v42, %v774_v41  ;;  %v2205_v18 = vpack.c.bf16 %v800_v15, %v798_v14  ;;  %v802_v20 = vld [vmem:[#allocation5 + $0x140] sm:$0xff]  ;;  %v809_v23 = vld [vmem:[#allocation5 + $0x178] sm:$0xff] }
  0xb1   : > { %v2183_v46 = vpack.c.bf16 %v781_v44, %v779_v43  ;;  %v2209_v24 = vpack.c.bf16 %v804_v21, %v802_v20  ;;  %v2211_v25 = vpack.c.bf16 %v809_v23, %v807_v22  ;;  %v806_v26 = vld [vmem:[#allocation5 + $0x160] sm:$0xff]  ;;  %v813_v29 = vld [vmem:[#allocation5 + $0x198] sm:$0xff]  ;;  %v812_v33 = vld [vmem:[#allocation5 + $0x190] sm:$0xff]  ;;  %v530_v44 = vlaneseq }
  0xb2   : > { %2178 = vmatpush1.bf16.msra.mxu0 %v2177_v39  ;;  %v2213_v30 = vpack.c.bf16 %v808_v27, %v806_v26  ;;  %v2215_v31 = vpack.c.bf16 %v813_v29, %v811_v28  ;;  %v810_v32 = vld [vmem:[#allocation5 + $0x180] sm:$0xff]  ;;  %v815_v34 = vld [vmem:[#allocation5 + $0x1a8] sm:$0xff]  ;;  %v817_v35 = vld [vmem:[#allocation5 + $0x1b8] sm:$0xff] }
  0xb3   : > { %2142 = vmatpush1.bf16.msra.mxu1 %v2141_v48  ;;  %2180 = vmatprep.subr.bf16.mxu0 %v2179_v40  ;;  %v780_v48 = vld [vmem:[#allocation5 + $0x90] sm:$0xff]  ;;  %v2217_v36 = vpack.c.bf16 %v812_v33, %v810_v32  ;;  %v2219_v37 = vpack.c.bf16 %v817_v35, %v815_v34  ;;  %v814_v38 = vld [vmem:[#allocation5 + $0x1a0] sm:$0xff]  ;;  %v819_v40 = vld [vmem:[#allocation5 + $0x1c8] sm:$0xff] }
  0xb4   : > { %2144 = vmatprep.subr.bf16.mxu1 %v2143_v49  ;;  %v783_v49 = vld [vmem:[#allocation5 + $0xa8] sm:$0xff]  ;;  %v2185_v51 = vpack.c.bf16 %v780_v48, %v778_v47  ;;  %v816_v39 = vld [vmem:[#allocation5 + $0x1b0] sm:$0xff]  ;;  %v821_v41 = vld [vmem:[#allocation5 + $0x1d8] sm:$0xff] }
  0xb5   : > { %v2187_v52 = vpack.c.bf16 %v785_v50, %v783_v49  ;;  %v2221_v42 = vpack.c.bf16 %v816_v39, %v814_v38  ;;  %v2223_v43 = vpack.c.bf16 %v821_v41, %v819_v40  ;;  %v528_v47 = vld [vmem:[%s3491_s2] sm:$0x3]  ;;  %v923_v14 = vld [vmem:[#allocation2 + $0x248] sm:$0xff]  ;;  %v925_v15 = vld [vmem:[#allocation2 + $0x258] sm:$0xff] }
  0xb6   : > { %2182 = vmatpush1.bf16.msra.mxu0 %v2181_v45  ;;  %v531_v45 = vshrl.u32 %v530_v44, 7  ;;  %v927_v20 = vld [vmem:[#allocation2 + $0x268] sm:$0xff]  ;;  %v929_v21 = vld [vmem:[#allocation2 + $0x278] sm:$0xff] }
  0xb7   : > { %2146 = vmatpush1.bf16.msra.mxu1 %v2145_v54  ;;  %2184 = vmatprep.subr.bf16.mxu0 %v2183_v46  ;;  %v784_v54 = vld [vmem:[#allocation5 + $0xb0] sm:$0xff]  ;;  %v2243_v23 = vpack.c.bf16 %v929_v21, %v927_v20  ;;  %v931_v26 = vld [vmem:[#allocation2 + $0x288] sm:$0xff]  ;;  %v933_v27 = vld [vmem:[#allocation2 + $0x298] sm:$0xff] }
  0xb8   : > { %2148 = vmatprep.subr.bf16.mxu1 %v2147_v55  ;;  %v787_v55 = vld [vmem:[#allocation5 + $0xc8] sm:$0xff]  ;;  %v2189_v57 = vpack.c.bf16 %v784_v54, %v782_v53  ;;  %v3251_v46 = vsub.s32 0, %v531_v45  ;;  %v3256_v48 = vsub.s32 1, %v531_v45  ;;  %v2247_v29 = vpack.c.bf16 %v933_v27, %v931_v26  ;;  %v937_v33 = vld [vmem:[#allocation2 + $0x2b8] sm:$0xff]  ;;  %v962_v21 = vld [vmem:[#allocation2 + $0x380] sm:$0xff] }
  0xb9   : > { %v2191_v58 = vpack.c.bf16 %v789_v56, %v787_v55  ;;  %v935_v32 = vld [vmem:[#allocation2 + $0x2a8] sm:$0xff]  ;;  %v941_v39 = vld [vmem:[#allocation2 + $0x2d8] sm:$0xff]  ;;  %v966_v27 = vld [vmem:[#allocation2 + $0x3a0] sm:$0xff] }
  0xba   : > { %2186 = vmatpush1.bf16.msra.mxu0 %v2185_v51  ;;  %v533_v49 = vrot.slane %v528_v47, %v3251_v46  ;;  %v537_v50 = vrot.slane %v528_v47, %v3256_v48  ;;  %v2251_v35 = vpack.c.bf16 %v937_v33, %v935_v32  ;;  %v939_v38 = vld [vmem:[#allocation2 + $0x2c8] sm:$0xff]  ;;  %v945_v45 = vld [vmem:[#allocation2 + $0x2f8] sm:$0xff] }
  0xbb   : > { %2150 = vmatpush1.bf16.msra.mxu1 %v2149_v60  ;;  %2188 = vmatprep.subr.bf16.mxu0 %v2187_v52  ;;  %v788_v60 = vld [vmem:[#allocation5 + $0xd0] sm:$0xff]  ;;  %v2255_v41 = vpack.c.bf16 %v941_v39, %v939_v38  ;;  %v943_v44 = vld [vmem:[#allocation2 + $0x2e8] sm:$0xff] }
  0xbc   : > { %2152 = vmatprep.subr.bf16.mxu1 %v2151_v61  ;;  %v791_v61 = vld [vmem:[#allocation5 + $0xe8] sm:$0xff]  ;;  %v2193_v63 = vpack.c.bf16 %v788_v60, %v786_v59 }
  0xbd   : > { %v2195_v1 = vpack.c.bf16 %v793_v62, %v791_v61  ;;  %v823_v60 = vld [vmem:[#allocation5 + $0x1e8] sm:$0xff]  ;;  %v825_v61 = vld [vmem:[#allocation5 + $0x1f8] sm:$0xff] }
  0xbe   : > { %2190 = vmatpush1.bf16.msra.mxu0 %v2189_v57  ;;  %v818_v57 = vld [vmem:[#allocation5 + $0x1c0] sm:$0xff]  ;;  %v2227_v62 = vpack.c.bf16 %v825_v61, %v823_v60  ;;  %v948_v61 = vld [vmem:[#allocation2 + $0x310] sm:$0xff]  ;;  %v971_v39 = vld [vmem:[#allocation2 + $0x3c8] sm:$0xff] }
  0xbf   : > { %2154 = vmatpush1.bf16.msra.mxu1 %v2153_v3  ;;  %2192 = vmatprep.subr.bf16.mxu0 %v2191_v58  ;;  %v792_v3 = vld [vmem:[#allocation5 + $0xf0] sm:$0xff]  ;;  %v946_v60 = vld [vmem:[#allocation2 + $0x300] sm:$0xff] }
  0xc0   : > { %2156 = vmatprep.subr.bf16.mxu1 %v2155_v4  ;;  %v795_v4 = vld [vmem:[#allocation5 + $0x108] sm:$0xff]  ;;  %v2197_v6 = vpack.c.bf16 %v792_v3, %v790_v2  ;;  %v820_v58 = vld [vmem:[#allocation5 + $0x1d0] sm:$0xff] }
  0xc1   : > { %v2199_v7 = vpack.c.bf16 %v797_v5, %v795_v4  ;;  %v2225_v59 = vpack.c.bf16 %v820_v58, %v818_v57  ;;  %v915_v3 = vld [vmem:[#allocation2 + $0x208] sm:$0xff]  ;;  %v917_v4 = vld [vmem:[#allocation2 + $0x218] sm:$0xff]  ;;  %v914_v5 = vld [vmem:[#allocation2 + $0x200] sm:$0xff] }
  0xc2   : > { %2194 = vmatpush1.bf16.msra.mxu0 %v2193_v63  ;;  %v822_v63 = vld [vmem:[#allocation5 + $0x1e0] sm:$0xff]  ;;  %v949_v57 = vld [vmem:[#allocation2 + $0x318] sm:$0xff] }
  0xc3   : > { %2158 = vmatpush1.bf16.msra.mxu1 %v2157_v9  ;;  %2196 = vmatprep.subr.bf16.mxu0 %v2195_v1  ;;  %v796_v9 = vld [vmem:[#allocation5 + $0x110] sm:$0xff] }
  0xc4   : > { %2160 = vmatprep.subr.bf16.mxu1 %v2159_v10  ;;  %v799_v10 = vld [vmem:[#allocation5 + $0x128] sm:$0xff]  ;;  %v2201_v12 = vpack.c.bf16 %v796_v9, %v794_v8  ;;  %v824_v1 = vld [vmem:[#allocation5 + $0x1f0] sm:$0xff]  ;;  %v921_v9 = vld [vmem:[#allocation2 + $0x238] sm:$0xff] }
  0xc5   : > { %v2229_v2 = vpack.c.bf16 %v824_v1, %v822_v63  ;;  %v919_v8 = vld [vmem:[#allocation2 + $0x228] sm:$0xff]  ;;  %v953_v63 = vld [vmem:[#allocation2 + $0x338] sm:$0xff]  ;;  %v2265_v1 = vpack.c.bf16 %v948_v61, %v946_v60  ;;  %v1067_v61 = vld [vmem:[#allocation5 + $0x210] sm:$0xff] }
  0xc6   : > { %2198 = vmatpush1.bf16.msra.mxu0 %v2197_v6  ;;  %v2231_v6 = vpack.c.bf16 %v917_v4, %v915_v3  ;;  %v950_v3 = vld [vmem:[#allocation2 + $0x320] sm:$0xff]  ;;  %v952_v4 = vld [vmem:[#allocation2 + $0x330] sm:$0xff] }
  0xc7   : > { %2162 = vmatpush1.bf16.msra.mxu1 %v2161_v13  ;;  %2200 = vmatprep.subr.bf16.mxu0 %v2199_v7  ;;  %v2203_v13 = vpack.c.bf16 %v801_v11, %v799_v10  ;;  %v916_v7 = vld [vmem:[#allocation2 + $0x210] sm:$0xff]  ;;  %v2235_v11 = vpack.c.bf16 %v921_v9, %v919_v8  ;;  %v954_v9 = vld [vmem:[#allocation2 + $0x340] sm:$0xff] }
  0xc8   : > { %2164 = vmatprep.subr.bf16.mxu1 %v2163_v16  ;;  %v803_v16 = vld [vmem:[#allocation5 + $0x148] sm:$0xff]  ;;  %v2233_v10 = vpack.c.bf16 %v916_v7, %v914_v5  ;;  %v2269_v7 = vpack.c.bf16 %v952_v4, %v950_v3  ;;  %v1069_v3 = vld [vmem:[#allocation5 + $0x220] sm:$0xff]  ;;  %v1071_v4 = vld [vmem:[#allocation5 + $0x230] sm:$0xff] }
  0xc9   : > { %v955_v5 = vld [vmem:[#allocation2 + $0x348] sm:$0xff] }
  0xca   : > { %2202 = vmatpush1.bf16.msra.mxu0 %v2201_v12  ;;  %v918_v12 = vld [vmem:[#allocation2 + $0x220] sm:$0xff] }
  0xcb   : > { %2166 = vmatpush1.bf16.msra.mxu1 %v2165_v19  ;;  %2204 = vmatprep.subr.bf16.mxu0 %v2203_v13  ;;  %v2207_v19 = vpack.c.bf16 %v805_v17, %v803_v16  ;;  %v920_v13 = vld [vmem:[#allocation2 + $0x230] sm:$0xff]  ;;  %v2239_v17 = vpack.c.bf16 %v925_v15, %v923_v14  ;;  %v958_v15 = vld [vmem:[#allocation2 + $0x360] sm:$0xff] }
  0xcc   : > { %2232 = vmatprep.subr.bf16.mxu1 %v2231_v6  ;;  %v2237_v16 = vpack.c.bf16 %v920_v13, %v918_v12  ;;  %v957_v6 = vld [vmem:[#allocation2 + $0x358] sm:$0xff] }
  0xcd   : > { %v2271_v8 = vpack.c.bf16 %v957_v6, %v955_v5  ;;  %v961_v12 = vld [vmem:[#allocation2 + $0x378] sm:$0xff]  ;;  %v1074_v5 = vld [vmem:[#allocation5 + $0x248] sm:$0xff] }
  0xce   : > { %2206 = vmatpush1.bf16.msra.mxu0 %v2205_v18  ;;  %v922_v18 = vld [vmem:[#allocation2 + $0x240] sm:$0xff]  ;;  %v1076_v6 = vld [vmem:[#allocation5 + $0x258] sm:$0xff] }
  0xcf   : > { %2208 = vmatprep.subr.bf16.mxu0 %v2207_v19  ;;  %v924_v19 = vld [vmem:[#allocation2 + $0x250] sm:$0xff] }
  0xd0   : > { %v2241_v22 = vpack.c.bf16 %v924_v19, %v922_v18  ;;  %v965_v18 = vld [vmem:[#allocation2 + $0x398] sm:$0xff] }
  0xd2   : > { %2210 = vmatpush1.bf16.msra.mxu0 %v2209_v24  ;;  %v926_v24 = vld [vmem:[#allocation2 + $0x260] sm:$0xff] }
  0xd3   : > { %2212 = vmatprep.subr.bf16.mxu0 %v2211_v25  ;;  %v928_v25 = vld [vmem:[#allocation2 + $0x270] sm:$0xff] }
  0xd4   : > { %v2245_v28 = vpack.c.bf16 %v928_v25, %v926_v24  ;;  %v969_v24 = vld [vmem:[#allocation2 + $0x3b8] sm:$0xff] }
  0xd6   : > { %2214 = vmatpush1.bf16.msra.mxu0 %v2213_v30  ;;  %v930_v30 = vld [vmem:[#allocation2 + $0x280] sm:$0xff] }
  0xd7   : > { %2216 = vmatprep.subr.bf16.mxu0 %v2215_v31  ;;  %v932_v31 = vld [vmem:[#allocation2 + $0x290] sm:$0xff] }
  0xd8   : > { %v2249_v34 = vpack.c.bf16 %v932_v31, %v930_v30  ;;  %v677_v30 = vld [vmem:[%s3493_s4] sm:$0x3] }
  0xd9   : > { %v682_v31 = vrot.slane %v677_v30, %v3251_v46  ;;  %v686_v32 = vrot.slane %v677_v30, %v3256_v48  ;;  %v1092_v30 = vld [vmem:[#allocation5 + $0x2d8] sm:$0xff] }
  0xda   : > { %2218 = vmatpush1.bf16.msra.mxu0 %v2217_v36  ;;  %v934_v36 = vld [vmem:[#allocation2 + $0x2a0] sm:$0xff] }
  0xdb   : > { %2220 = vmatprep.subr.bf16.mxu0 %v2219_v37  ;;  %v936_v37 = vld [vmem:[#allocation2 + $0x2b0] sm:$0xff] }
  0xdc   : > { %v2253_v40 = vpack.c.bf16 %v936_v37, %v934_v36 }
  0xde   : > { %2222 = vmatpush1.bf16.msra.mxu0 %v2221_v42  ;;  %v938_v42 = vld [vmem:[#allocation2 + $0x2c0] sm:$0xff] }
  0xdf   : > { %2224 = vmatprep.subr.bf16.mxu0 %v2223_v43  ;;  %v940_v43 = vld [vmem:[#allocation2 + $0x2d0] sm:$0xff] }
  0xe0   : > { %v2257_v47 = vpack.c.bf16 %v940_v43, %v938_v42  ;;  %v970_v42 = vld [vmem:[#allocation2 + $0x3c0] sm:$0xff]  ;;  %v972_v43 = vld [vmem:[#allocation2 + $0x3d0] sm:$0xff] }
  0xe2   : > { %2226 = vmatpush1.bf16.msra.mxu0 %v2225_v59 }
  0xe3   : > { %2228 = vmatprep.subr.bf16.mxu0 %v2227_v62  ;;  %v951_v62 = vld [vmem:[#allocation2 + $0x328] sm:$0xff] }
  0xe6   : > { %2230 = vmatpush1.bf16.msra.mxu0 %v2229_v2  ;;  %v2267_v2 = vpack.c.bf16 %v953_v63, %v951_v62  ;;  %v1070_v62 = vld [vmem:[#allocation5 + $0x228] sm:$0xff]  ;;  %v1072_v63 = vld [vmem:[#allocation5 + $0x238] sm:$0xff] }
 0x17a   : > { %v606_v51 = vpop.f32.mrb[0].mxu0 }
 0x17b   : > { %v3260_v52 = vadd.f32 %v606_v51, %v533_v49  ;;  %v608_v53 = vpop.f32.mrb[1].mxu0  ;;  %v2259_v49 = vpack.c.bf16 %v945_v45, %v943_v44  ;;  %v944_v51 = vld [vmem:[#allocation2 + $0x2f0] sm:$0xff]  ;;  %v2289_v44 = vpack.c.bf16 %v972_v43, %v970_v42  ;;  %v975_v45 = vld [vmem:[#allocation2 + $0x3e8] sm:$0xff]  ;;  %v1100_v42 = vld [vmem:[#allocation5 + $0x318] sm:$0xff] }
 0x17c   : > { %v3262_v54 = vadd.f32 %v608_v53, %v537_v50  ;;  %v942_v50 = vld [vmem:[#allocation2 + $0x2e0] sm:$0xff]  ;;  %v947_v53 = vld [vmem:[#allocation2 + $0x308] sm:$0xff] }
 0x17d   : > { %v611_v56 = vmax.f32 %v3260_v52, 0.0  ;;  %v2261_v58 = vpack.c.bf16 %v944_v51, %v942_v50  ;;  %v2263_v59 = vpack.c.bf16 %v949_v57, %v947_v53  ;;  %v974_v50 = vld [vmem:[#allocation2 + $0x3e0] sm:$0xff]  ;;  %v976_v51 = vld [vmem:[#allocation2 + $0x3f0] sm:$0xff]  ;;  %v1066_v57 = vld [vmem:[#allocation5 + $0x208] sm:$0xff] }
 0x17e   : > { %v612_v55 = vmax.f32 %v3262_v54, 0.0  ;;  %v2293_v53 = vpack.c.bf16 %v976_v51, %v974_v50  ;;  %v1104_v50 = vld [vmem:[#allocation5 + $0x338] sm:$0xff]  ;;  %v1126_v52 = vld [vmem:[#allocation5 + $0x3e8] sm:$0xff]  ;;  %v1125_v54 = vld [vmem:[#allocation5 + $0x3e0] sm:$0xff] }
 0x180   : > { %753 = vmatprep.mubr.f32.mxu1 %v612_v55 }
 0x181   : > { %754 = vmatmul.mubr.f32.vlgmr.msra.gmra.mrb[0].mxu1 %v611_v56 }
 0x182   : > { %2234 = vmatpush1.bf16.msra.mxu1 %v2233_v10  ;;  %v956_v10 = vld [vmem:[#allocation2 + $0x350] sm:$0xff] }
 0x183   : > { %2236 = vmatprep.subr.bf16.mxu1 %v2235_v11  ;;  %v959_v11 = vld [vmem:[#allocation2 + $0x368] sm:$0xff]  ;;  %v2273_v13 = vpack.c.bf16 %v956_v10, %v954_v9  ;;  %v1073_v9 = vld [vmem:[#allocation5 + $0x240] sm:$0xff]  ;;  %v1075_v10 = vld [vmem:[#allocation5 + $0x250] sm:$0xff] }
 0x184   : > { %v2275_v14 = vpack.c.bf16 %v961_v12, %v959_v11  ;;  %v1078_v11 = vld [vmem:[#allocation5 + $0x268] sm:$0xff]  ;;  %v1080_v12 = vld [vmem:[#allocation5 + $0x278] sm:$0xff] }
 0x186   : > { %2238 = vmatpush1.bf16.msra.mxu1 %v2237_v16  ;;  %v960_v16 = vld [vmem:[#allocation2 + $0x370] sm:$0xff] }
 0x187   : > { %2240 = vmatprep.subr.bf16.mxu1 %v2239_v17  ;;  %v963_v17 = vld [vmem:[#allocation2 + $0x388] sm:$0xff]  ;;  %v2277_v19 = vpack.c.bf16 %v960_v16, %v958_v15  ;;  %v1077_v15 = vld [vmem:[#allocation5 + $0x260] sm:$0xff]  ;;  %v1079_v16 = vld [vmem:[#allocation5 + $0x270] sm:$0xff] }
 0x188   : > { %v2279_v20 = vpack.c.bf16 %v965_v18, %v963_v17  ;;  %v1082_v17 = vld [vmem:[#allocation5 + $0x288] sm:$0xff]  ;;  %v1084_v18 = vld [vmem:[#allocation5 + $0x298] sm:$0xff] }
 0x18a   : > { %2242 = vmatpush1.bf16.msra.mxu1 %v2241_v22  ;;  %v964_v22 = vld [vmem:[#allocation2 + $0x390] sm:$0xff] }
 0x18b   : > { %2244 = vmatprep.subr.bf16.mxu1 %v2243_v23  ;;  %v967_v23 = vld [vmem:[#allocation2 + $0x3a8] sm:$0xff]  ;;  %v2281_v25 = vpack.c.bf16 %v964_v22, %v962_v21  ;;  %v1081_v21 = vld [vmem:[#allocation5 + $0x280] sm:$0xff]  ;;  %v1083_v22 = vld [vmem:[#allocation5 + $0x290] sm:$0xff] }
 0x18c   : > { %v2283_v26 = vpack.c.bf16 %v969_v24, %v967_v23  ;;  %v1086_v23 = vld [vmem:[#allocation5 + $0x2a8] sm:$0xff]  ;;  %v1088_v24 = vld [vmem:[#allocation5 + $0x2b8] sm:$0xff] }
 0x18e   : > { %2246 = vmatpush1.bf16.msra.mxu1 %v2245_v28  ;;  %v968_v28 = vld [vmem:[#allocation2 + $0x3b0] sm:$0xff] }
 0x18f   : > { %2248 = vmatprep.subr.bf16.mxu1 %v2247_v29  ;;  %v2285_v29 = vpack.c.bf16 %v968_v28, %v966_v27  ;;  %v1085_v27 = vld [vmem:[#allocation5 + $0x2a0] sm:$0xff]  ;;  %v1087_v28 = vld [vmem:[#allocation5 + $0x2b0] sm:$0xff] }
 0x192   : > { %2250 = vmatpush1.bf16.msra.mxu1 %v2249_v34 }
 0x193   : > { %2252 = vmatprep.subr.bf16.mxu1 %v2251_v35 }
 0x196   : > { %2254 = vmatpush1.bf16.msra.mxu1 %v2253_v40  ;;  %v973_v40 = vld [vmem:[#allocation2 + $0x3d8] sm:$0xff] }
 0x197   : > { %2256 = vmatprep.subr.bf16.mxu1 %v2255_v41  ;;  %v2287_v41 = vpack.c.bf16 %v973_v40, %v971_v39  ;;  %v1093_v39 = vld [vmem:[#allocation5 + $0x2e0] sm:$0xff]  ;;  %v1095_v40 = vld [vmem:[#allocation5 + $0x2f0] sm:$0xff] }
 0x198   : > { %v2325_v43 = vpack.c.bf16 %v1095_v40, %v1093_v39  ;;  %v1219_v40 = vld [vmem:[#allocation2 + $0x408] sm:$0xff] }
 0x19a   : > { %2258 = vmatpush1.bf16.msra.mxu1 %v2257_v47  ;;  %v977_v47 = vld [vmem:[#allocation2 + $0x3f8] sm:$0xff] }
 0x19b   : > { %2260 = vmatprep.subr.bf16.mxu1 %v2259_v49  ;;  %v2291_v49 = vpack.c.bf16 %v977_v47, %v975_v45  ;;  %v1097_v45 = vld [vmem:[#allocation5 + $0x300] sm:$0xff]  ;;  %v1099_v47 = vld [vmem:[#allocation5 + $0x310] sm:$0xff] }
 0x19c   : > { %v2329_v51 = vpack.c.bf16 %v1099_v47, %v1097_v45  ;;  %v1223_v45 = vld [vmem:[#allocation2 + $0x428] sm:$0xff]  ;;  %v1225_v47 = vld [vmem:[#allocation2 + $0x438] sm:$0xff] }
 0x19e   : > { %2262 = vmatpush1.bf16.msra.mxu1 %v2261_v58  ;;  %v1068_v58 = vld [vmem:[#allocation5 + $0x218] sm:$0xff] }
 0x19f   : > { %2264 = vmatprep.subr.bf16.mxu1 %v2263_v59  ;;  %v1065_v59 = vld [vmem:[#allocation5 + $0x200] sm:$0xff]  ;;  %v2295_v60 = vpack.c.bf16 %v1068_v58, %v1066_v57  ;;  %v1103_v58 = vld [vmem:[#allocation5 + $0x330] sm:$0xff] }
 0x1a0   : > { %v1101_v57 = vld [vmem:[#allocation5 + $0x320] sm:$0xff] }
 0x1a1   : > { %2296 = vmatprep.subr.bf16.mxu0 %v2295_v60  ;;  %v1108_v60 = vld [vmem:[#allocation5 + $0x358] sm:$0xff] }
 0x1a2   : > { %2266 = vmatpush1.bf16.msra.mxu1 %v2265_v1  ;;  %v2297_v1 = vpack.c.bf16 %v1067_v61, %v1065_v59  ;;  %v1106_v59 = vld [vmem:[#allocation5 + $0x348] sm:$0xff]  ;;  %v2333_v61 = vpack.c.bf16 %v1103_v58, %v1101_v57  ;;  %v1229_v58 = vld [vmem:[#allocation2 + $0x458] sm:$0xff] }
 0x1a3   : > { %2268 = vmatprep.subr.bf16.mxu1 %v2267_v2  ;;  %v2299_v2 = vpack.c.bf16 %v1072_v63, %v1070_v62  ;;  %v2335_v62 = vpack.c.bf16 %v1108_v60, %v1106_v59  ;;  %v1105_v63 = vld [vmem:[#allocation5 + $0x340] sm:$0xff]  ;;  %v1227_v57 = vld [vmem:[#allocation2 + $0x448] sm:$0xff] }
 0x1a4   : > { %v2367_v60 = vpack.c.bf16 %v1229_v58, %v1227_v57  ;;  %v1262_v58 = vld [vmem:[#allocation2 + $0x560] sm:$0xff] }
 0x1a6   : > { %2270 = vmatpush1.bf16.msra.mxu1 %v2269_v7  ;;  %v2301_v7 = vpack.c.bf16 %v1071_v4, %v1069_v3  ;;  %v1112_v3 = vld [vmem:[#allocation5 + $0x378] sm:$0xff] }
 0x1a7   : > { %2272 = vmatprep.subr.bf16.mxu1 %v2271_v8  ;;  %v2303_v8 = vpack.c.bf16 %v1076_v6, %v1074_v5  ;;  %v1109_v6 = vld [vmem:[#allocation5 + $0x360] sm:$0xff] }
 0x1aa   : > { %2274 = vmatpush1.bf16.msra.mxu1 %v2273_v13  ;;  %v2305_v13 = vpack.c.bf16 %v1075_v10, %v1073_v9  ;;  %v1116_v9 = vld [vmem:[#allocation5 + $0x398] sm:$0xff] }
 0x1ab   : > { %2276 = vmatprep.subr.bf16.mxu1 %v2275_v14  ;;  %v2307_v14 = vpack.c.bf16 %v1080_v12, %v1078_v11  ;;  %v1113_v12 = vld [vmem:[#allocation5 + $0x380] sm:$0xff] }
 0x1ae   : > { %2278 = vmatpush1.bf16.msra.mxu1 %v2277_v19  ;;  %v2309_v19 = vpack.c.bf16 %v1079_v16, %v1077_v15  ;;  %v1120_v15 = vld [vmem:[#allocation5 + $0x3b8] sm:$0xff] }
 0x1af   : > { %2280 = vmatprep.subr.bf16.mxu1 %v2279_v20  ;;  %v2311_v20 = vpack.c.bf16 %v1084_v18, %v1082_v17  ;;  %v1117_v18 = vld [vmem:[#allocation5 + $0x3a0] sm:$0xff] }
 0x1b2   : > { %2282 = vmatpush1.bf16.msra.mxu1 %v2281_v25  ;;  %v2313_v25 = vpack.c.bf16 %v1083_v22, %v1081_v21  ;;  %v1124_v21 = vld [vmem:[#allocation5 + $0x3d8] sm:$0xff] }
 0x1b3   : > { %2284 = vmatprep.subr.bf16.mxu1 %v2283_v26  ;;  %v2315_v26 = vpack.c.bf16 %v1088_v24, %v1086_v23  ;;  %v826_v24 = vld [vmem:[%s3495_s6] sm:$0x3] }
 0x1b6   : > { %2286 = vmatpush1.bf16.msra.mxu1 %v2285_v29  ;;  %v1090_v29 = vld [vmem:[#allocation5 + $0x2c8] sm:$0xff] }
 0x1b7   : > { %2288 = vmatprep.subr.bf16.mxu1 %v2287_v41  ;;  %v1098_v41 = vld [vmem:[#allocation5 + $0x308] sm:$0xff] }
 0x1ba   : > { %2290 = vmatpush1.bf16.msra.mxu1 %v2289_v44  ;;  %v2327_v44 = vpack.c.bf16 %v1100_v42, %v1098_v41  ;;  %v1221_v41 = vld [vmem:[#allocation2 + $0x418] sm:$0xff]  ;;  %v1218_v42 = vld [vmem:[#allocation2 + $0x400] sm:$0xff] }
 0x1bb   : > { %2292 = vmatprep.subr.bf16.mxu1 %v2291_v49  ;;  %v1102_v49 = vld [vmem:[#allocation5 + $0x328] sm:$0xff] }
 0x1be   : > { %2294 = vmatpush1.bf16.msra.mxu1 %v2293_v53  ;;  %v2331_v53 = vpack.c.bf16 %v1104_v50, %v1102_v49  ;;  %v2363_v50 = vpack.c.bf16 %v1225_v47, %v1223_v45  ;;  %v1258_v47 = vld [vmem:[#allocation2 + $0x540] sm:$0xff] }
 0x254   : > { %v755_v33 = vpop.f32.mrb[0].mxu1 }
 0x255   : > { %v756_v34 = vadd.f32 %v755_v33, %v682_v31  ;;  %v757_v35 = vpop.f32.mrb[1].mxu1  ;;  %v2317_v31 = vpack.c.bf16 %v1087_v28, %v1085_v27  ;;  %v1089_v33 = vld [vmem:[#allocation5 + $0x2c0] sm:$0xff] }
 0x256   : > { %v758_v36 = vadd.f32 %v757_v35, %v686_v32  ;;  %v2319_v32 = vpack.c.bf16 %v1092_v30, %v1090_v29  ;;  %v1094_v35 = vld [vmem:[#allocation5 + $0x2e8] sm:$0xff] }
 0x257   : > { %v760_v38 = vmax.f32 %v756_v34, 0.0  ;;  %v1091_v34 = vld [vmem:[#allocation5 + $0x2d0] sm:$0xff] }
 0x258   : > { %v761_v37 = vmax.f32 %v758_v36, 0.0  ;;  %v1096_v36 = vld [vmem:[#allocation5 + $0x2f8] sm:$0xff] }
 0x25a   : > { %902 = vmatprep.mubr.f32.mxu0 %v761_v37  ;;  %v2321_v37 = vpack.c.bf16 %v1091_v34, %v1089_v33 }
 0x25b   : > { %903 = vmatmul.mubr.f32.vlgmr.msra.gmra.mrb[2].mxu0 %v760_v38  ;;  %v2323_v38 = vpack.c.bf16 %v1096_v36, %v1094_v35  ;;  %v1121_v35 = vld [vmem:[#allocation5 + $0x3c0] sm:$0xff]  ;;  %v1123_v36 = vld [vmem:[#allocation5 + $0x3d0] sm:$0xff] }
 0x25c   : > { %2298 = vmatpush1.bf16.msra.mxu0 %v2297_v1  ;;  %v1107_v1 = vld [vmem:[#allocation5 + $0x350] sm:$0xff] }
 0x25d   : > { %2300 = vmatprep.subr.bf16.mxu0 %v2299_v2  ;;  %v1110_v2 = vld [vmem:[#allocation5 + $0x368] sm:$0xff]  ;;  %v2337_v4 = vpack.c.bf16 %v1107_v1, %v1105_v63  ;;  %v1233_v1 = vld [vmem:[#allocation2 + $0x478] sm:$0xff] }
 0x25e   : > { %v2339_v5 = vpack.c.bf16 %v1112_v3, %v1110_v2  ;;  %v1231_v63 = vld [vmem:[#allocation2 + $0x468] sm:$0xff] }
 0x25f   : > { %v2371_v3 = vpack.c.bf16 %v1233_v1, %v1231_v63  ;;  %v1266_v1 = vld [vmem:[#allocation2 + $0x580] sm:$0xff] }
 0x260   : > { %2302 = vmatpush1.bf16.msra.mxu0 %v2301_v7  ;;  %v1111_v7 = vld [vmem:[#allocation5 + $0x370] sm:$0xff] }
 0x261   : > { %2304 = vmatprep.subr.bf16.mxu0 %v2303_v8  ;;  %v1114_v8 = vld [vmem:[#allocation5 + $0x388] sm:$0xff]  ;;  %v2341_v10 = vpack.c.bf16 %v1111_v7, %v1109_v6  ;;  %v1237_v7 = vld [vmem:[#allocation2 + $0x498] sm:$0xff] }
 0x262   : > { %v2343_v11 = vpack.c.bf16 %v1116_v9, %v1114_v8  ;;  %v1235_v6 = vld [vmem:[#allocation2 + $0x488] sm:$0xff] }
 0x263   : > { %v2375_v9 = vpack.c.bf16 %v1237_v7, %v1235_v6  ;;  %v1270_v7 = vld [vmem:[#allocation2 + $0x5a0] sm:$0xff] }
 0x264   : > { %2306 = vmatpush1.bf16.msra.mxu0 %v2305_v13  ;;  %v1115_v13 = vld [vmem:[#allocation5 + $0x390] sm:$0xff] }
 0x265   : > { %2308 = vmatprep.subr.bf16.mxu0 %v2307_v14  ;;  %v1118_v14 = vld [vmem:[#allocation5 + $0x3a8] sm:$0xff]  ;;  %v2345_v16 = vpack.c.bf16 %v1115_v13, %v1113_v12  ;;  %v1241_v13 = vld [vmem:[#allocation2 + $0x4b8] sm:$0xff] }
 0x266   : > { %v2347_v17 = vpack.c.bf16 %v1120_v15, %v1118_v14  ;;  %v1239_v12 = vld [vmem:[#allocation2 + $0x4a8] sm:$0xff] }
 0x267   : > { %v2379_v15 = vpack.c.bf16 %v1241_v13, %v1239_v12 }
 0x268   : > { %2310 = vmatpush1.bf16.msra.mxu0 %v2309_v19  ;;  %v1119_v19 = vld [vmem:[#allocation5 + $0x3b0] sm:$0xff] }
 0x269   : > { %2312 = vmatprep.subr.bf16.mxu0 %v2311_v20  ;;  %v1122_v20 = vld [vmem:[#allocation5 + $0x3c8] sm:$0xff]  ;;  %v2349_v22 = vpack.c.bf16 %v1119_v19, %v1117_v18  ;;  %v1245_v19 = vld [vmem:[#allocation2 + $0x4d8] sm:$0xff] }
 0x26a   : > { %v2351_v23 = vpack.c.bf16 %v1124_v21, %v1122_v20  ;;  %v1243_v18 = vld [vmem:[#allocation2 + $0x4c8] sm:$0xff] }
 0x26b   : > { %v2383_v21 = vpack.c.bf16 %v1245_v19, %v1243_v18  ;;  %v1275_v19 = vld [vmem:[#allocation2 + $0x5c8] sm:$0xff] }
 0x26c   : > { %2314 = vmatpush1.bf16.msra.mxu0 %v2313_v25  ;;  %v831_v25 = vrot.slane %v826_v24, %v3251_v46 }
 0x26d   : > { %2316 = vmatprep.subr.bf16.mxu0 %v2315_v26  ;;  %v835_v26 = vrot.slane %v826_v24, %v3256_v48  ;;  %v1247_v24 = vld [vmem:[#allocation2 + $0x4e8] sm:$0xff] }
 0x270   : > { %2318 = vmatpush1.bf16.msra.mxu0 %v2317_v31 }
 0x271   : > { %2320 = vmatprep.subr.bf16.mxu0 %v2319_v32 }
 0x274   : > { %2322 = vmatpush1.bf16.msra.mxu0 %v2321_v37  ;;  %v2353_v37 = vpack.c.bf16 %v1123_v36, %v1121_v35  ;;  %v1253_v35 = vld [vmem:[#allocation2 + $0x518] sm:$0xff] }
 0x275   : > { %2324 = vmatprep.subr.bf16.mxu0 %v2323_v38 }
 0x278   : > { %2326 = vmatpush1.bf16.msra.mxu0 %v2325_v43  ;;  %v2359_v43 = vpack.c.bf16 %v1221_v41, %v1219_v40  ;;  %v1254_v40 = vld [vmem:[#allocation2 + $0x520] sm:$0xff]  ;;  %v1256_v41 = vld [vmem:[#allocation2 + $0x530] sm:$0xff] }
 0x279   : > { %2328 = vmatprep.subr.bf16.mxu0 %v2327_v44  ;;  %v1220_v44 = vld [vmem:[#allocation2 + $0x410] sm:$0xff] }
 0x27a   : > { %v2361_v49 = vpack.c.bf16 %v1220_v44, %v1218_v42  ;;  %2360 = vmatprep.subr.bf16.mxu1 %v2359_v43  ;;  %v1259_v42 = vld [vmem:[#allocation2 + $0x548] sm:$0xff]  ;;  %v1261_v43 = vld [vmem:[#allocation2 + $0x558] sm:$0xff]  ;;  %v2397_v44 = vpack.c.bf16 %v1256_v41, %v1254_v40  ;;  %v1373_v40 = vld [vmem:[#allocation5 + $0x420] sm:$0xff] }
 0x27b   : > { %v2399_v45 = vpack.c.bf16 %v1261_v43, %v1259_v42  ;;  %v1375_v41 = vld [vmem:[#allocation5 + $0x430] sm:$0xff]  ;;  %v1378_v42 = vld [vmem:[#allocation5 + $0x448] sm:$0xff]  ;;  %v1380_v43 = vld [vmem:[#allocation5 + $0x458] sm:$0xff] }
 0x27c   : > { %2330 = vmatpush1.bf16.msra.mxu0 %v2329_v51  ;;  %v1222_v51 = vld [vmem:[#allocation2 + $0x420] sm:$0xff] }
 0x27d   : > { %2332 = vmatprep.subr.bf16.mxu0 %v2331_v53  ;;  %v1224_v53 = vld [vmem:[#allocation2 + $0x430] sm:$0xff] }
 0x27e   : > { %v2365_v59 = vpack.c.bf16 %v1224_v53, %v1222_v51  ;;  %v1265_v51 = vld [vmem:[#allocation2 + $0x578] sm:$0xff] }
 0x280   : > { %2334 = vmatpush1.bf16.msra.mxu0 %v2333_v61  ;;  %v1226_v61 = vld [vmem:[#allocation2 + $0x440] sm:$0xff] }
 0x281   : > { %2336 = vmatprep.subr.bf16.mxu0 %v2335_v62  ;;  %v1228_v62 = vld [vmem:[#allocation2 + $0x450] sm:$0xff] }
 0x282   : > { %v2369_v2 = vpack.c.bf16 %v1228_v62, %v1226_v61  ;;  %v1269_v61 = vld [vmem:[#allocation2 + $0x598] sm:$0xff] }
 0x284   : > { %2338 = vmatpush1.bf16.msra.mxu0 %v2337_v4  ;;  %v1230_v4 = vld [vmem:[#allocation2 + $0x460] sm:$0xff] }
 0x285   : > { %2340 = vmatprep.subr.bf16.mxu0 %v2339_v5  ;;  %v1232_v5 = vld [vmem:[#allocation2 + $0x470] sm:$0xff] }
 0x286   : > { %v2373_v8 = vpack.c.bf16 %v1232_v5, %v1230_v4  ;;  %v1273_v4 = vld [vmem:[#allocation2 + $0x5b8] sm:$0xff] }
 0x288   : > { %2342 = vmatpush1.bf16.msra.mxu0 %v2341_v10  ;;  %v1234_v10 = vld [vmem:[#allocation2 + $0x480] sm:$0xff] }
 0x289   : > { %2344 = vmatprep.subr.bf16.mxu0 %v2343_v11  ;;  %v1236_v11 = vld [vmem:[#allocation2 + $0x490] sm:$0xff] }
 0x28a   : > { %v2377_v14 = vpack.c.bf16 %v1236_v11, %v1234_v10  ;;  %v2025_v10 = vld [vmem:[%s3493_s4 + $0x2] sm:$0x3] }
 0x28b   : > { %v984_v11 = vrot.slane %v2025_v10, %v3251_v46  ;;  %v988_v12 = vrot.slane %v2025_v10, %v3256_v48  ;;  %v1396_v10 = vld [vmem:[#allocation5 + $0x4d8] sm:$0xff] }
 0x28c   : > { %2346 = vmatpush1.bf16.msra.mxu0 %v2345_v16  ;;  %v1238_v16 = vld [vmem:[#allocation2 + $0x4a0] sm:$0xff] }
 0x28d   : > { %2348 = vmatprep.subr.bf16.mxu0 %v2347_v17  ;;  %v1240_v17 = vld [vmem:[#allocation2 + $0x4b0] sm:$0xff] }
 0x28e   : > { %v2381_v20 = vpack.c.bf16 %v1240_v17, %v1238_v16 }
 0x290   : > { %2350 = vmatpush1.bf16.msra.mxu0 %v2349_v22  ;;  %v1242_v22 = vld [vmem:[#allocation2 + $0x4c0] sm:$0xff] }
 0x291   : > { %2352 = vmatprep.subr.bf16.mxu0 %v2351_v23  ;;  %v1244_v23 = vld [vmem:[#allocation2 + $0x4d0] sm:$0xff] }
 0x294   : > { %2354 = vmatpush1.bf16.msra.mxu0 %v2353_v37 }
 0x32e   : > { %v904_v27 = vpop.f32.mrb[2].mxu0 }
 0x32f   : > { %v905_v28 = vadd.f32 %v904_v27, %v831_v25  ;;  %v906_v29 = vpop.f32.mrb[3].mxu0  ;;  %v1249_v25 = vld [vmem:[#allocation2 + $0x4f8] sm:$0xff] }
 0x330   : > { %v907_v30 = vadd.f32 %v906_v29, %v835_v26  ;;  %v2385_v26 = vpack.c.bf16 %v1244_v23, %v1242_v22  ;;  %v2387_v27 = vpack.c.bf16 %v1249_v25, %v1247_v24  ;;  %v1248_v29 = vld [vmem:[#allocation2 + $0x4f0] sm:$0xff]  ;;  %v1274_v22 = vld [vmem:[#allocation2 + $0x5c0] sm:$0xff]  ;;  %v1279_v25 = vld [vmem:[#allocation2 + $0x5e8] sm:$0xff] }
 0x331   : > { %v3282_v31 = vadd.f32 %v905_v28, %v611_v56  ;;  %v1128_v56 = vld [vmem:[#allocation5 + $0x3f8] sm:$0xff]  ;;  %v1246_v28 = vld [vmem:[#allocation2 + $0x4e0] sm:$0xff]  ;;  %v1276_v23 = vld [vmem:[#allocation2 + $0x5d0] sm:$0xff] }
 0x332   : > { %v3286_v32 = vadd.f32 %v907_v30, %v612_v55  ;;  %v2355_v38 = vpack.c.bf16 %v1128_v56, %v1126_v52  ;;  %v1127_v55 = vld [vmem:[#allocation5 + $0x3f0] sm:$0xff]  ;;  %v1251_v30 = vld [vmem:[#allocation2 + $0x508] sm:$0xff]  ;;  %v2389_v36 = vpack.c.bf16 %v1248_v29, %v1246_v28  ;;  %v1250_v52 = vld [vmem:[#allocation2 + $0x500] sm:$0xff]  ;;  %v2417_v24 = vpack.c.bf16 %v1276_v23, %v1274_v22 }
 0x333   : > { %v911_v34 = vmax.f32 %v3282_v31, 0.0  ;;  %v2357_v39 = vpack.c.bf16 %v1127_v55, %v1125_v54  ;;  %v2391_v37 = vpack.c.bf16 %v1253_v35, %v1251_v30  ;;  %v1252_v56 = vld [vmem:[#allocation2 + $0x510] sm:$0xff]  ;;  %v1257_v54 = vld [vmem:[#allocation2 + $0x538] sm:$0xff]  ;;  %v1278_v28 = vld [vmem:[#allocation2 + $0x5e0] sm:$0xff] }
 0x334   : > { %v912_v33 = vmax.f32 %v3286_v32, 0.0  ;;  %2356 = vmatprep.subr.bf16.mxu0 %v2355_v38  ;;  %v1255_v38 = vld [vmem:[#allocation2 + $0x528] sm:$0xff]  ;;  %v2393_v55 = vpack.c.bf16 %v1252_v56, %v1250_v52  ;;  %v1280_v29 = vld [vmem:[#allocation2 + $0x5f0] sm:$0xff]  ;;  %v1404_v22 = vld [vmem:[#allocation5 + $0x518] sm:$0xff] }
 0x335   : > { %2358 = vmatpush1.bf16.msra.mxu0 %v2357_v39  ;;  %v2395_v39 = vpack.c.bf16 %v1257_v54, %v1255_v38  ;;  %v2421_v30 = vpack.c.bf16 %v1280_v29, %v1278_v28  ;;  %v1370_v35 = vld [vmem:[#allocation5 + $0x408] sm:$0xff]  ;;  %v1371_v56 = vld [vmem:[#allocation5 + $0x410] sm:$0xff]  ;;  %v1376_v54 = vld [vmem:[#allocation5 + $0x438] sm:$0xff] }
 0x336   : > { %1055 = vmatprep.mubr.f32.mxu1 %v912_v33  ;;  %v1374_v38 = vld [vmem:[#allocation5 + $0x428] sm:$0xff]  ;;  %v1408_v28 = vld [vmem:[#allocation5 + $0x538] sm:$0xff]  ;;  %v1429_v32 = vld [vmem:[#allocation5 + $0x5e0] sm:$0xff] }
 0x337   : > { %1056 = vmatmul.mubr.f32.vlgmr.msra.gmra.mrb[2].mxu1 %v911_v34  ;;  %v1430_v31 = vld [vmem:[#allocation5 + $0x5e8] sm:$0xff] }
 0x338   : > { %2362 = vmatpush1.bf16.msra.mxu1 %v2361_v49  ;;  %v1260_v49 = vld [vmem:[#allocation2 + $0x550] sm:$0xff] }
 0x339   : > { %2364 = vmatprep.subr.bf16.mxu1 %v2363_v50  ;;  %v1263_v50 = vld [vmem:[#allocation2 + $0x568] sm:$0xff]  ;;  %v2401_v53 = vpack.c.bf16 %v1260_v49, %v1258_v47  ;;  %v1377_v47 = vld [vmem:[#allocation5 + $0x440] sm:$0xff]  ;;  %v1379_v49 = vld [vmem:[#allocation5 + $0x450] sm:$0xff] }
 0x33a   : > { %v2403_v57 = vpack.c.bf16 %v1265_v51, %v1263_v50  ;;  %v1382_v50 = vld [vmem:[#allocation5 + $0x468] sm:$0xff]  ;;  %v1384_v51 = vld [vmem:[#allocation5 + $0x478] sm:$0xff] }
 0x33c   : > { %2366 = vmatpush1.bf16.msra.mxu1 %v2365_v59  ;;  %v1264_v59 = vld [vmem:[#allocation2 + $0x570] sm:$0xff] }
 0x33d   : > { %2368 = vmatprep.subr.bf16.mxu1 %v2367_v60  ;;  %v1267_v60 = vld [vmem:[#allocation2 + $0x588] sm:$0xff]  ;;  %v2405_v62 = vpack.c.bf16 %v1264_v59, %v1262_v58  ;;  %v1381_v58 = vld [vmem:[#allocation5 + $0x460] sm:$0xff]  ;;  %v1383_v59 = vld [vmem:[#allocation5 + $0x470] sm:$0xff] }
 0x33e   : > { %v2407_v63 = vpack.c.bf16 %v1269_v61, %v1267_v60  ;;  %v1386_v60 = vld [vmem:[#allocation5 + $0x488] sm:$0xff]  ;;  %v1388_v61 = vld [vmem:[#allocation5 + $0x498] sm:$0xff] }
 0x340   : > { %2370 = vmatpush1.bf16.msra.mxu1 %v2369_v2  ;;  %v1268_v2 = vld [vmem:[#allocation2 + $0x590] sm:$0xff] }
 0x341   : > { %2372 = vmatprep.subr.bf16.mxu1 %v2371_v3  ;;  %v1271_v3 = vld [vmem:[#allocation2 + $0x5a8] sm:$0xff]  ;;  %v2409_v5 = vpack.c.bf16 %v1268_v2, %v1266_v1  ;;  %v1385_v1 = vld [vmem:[#allocation5 + $0x480] sm:$0xff]  ;;  %v1387_v2 = vld [vmem:[#allocation5 + $0x490] sm:$0xff] }
 0x342   : > { %v2411_v6 = vpack.c.bf16 %v1273_v4, %v1271_v3  ;;  %v1390_v3 = vld [vmem:[#allocation5 + $0x4a8] sm:$0xff]  ;;  %v1392_v4 = vld [vmem:[#allocation5 + $0x4b8] sm:$0xff] }
 0x344   : > { %2374 = vmatpush1.bf16.msra.mxu1 %v2373_v8  ;;  %v1272_v8 = vld [vmem:[#allocation2 + $0x5b0] sm:$0xff] }
 0x345   : > { %2376 = vmatprep.subr.bf16.mxu1 %v2375_v9  ;;  %v2413_v9 = vpack.c.bf16 %v1272_v8, %v1270_v7  ;;  %v1389_v7 = vld [vmem:[#allocation5 + $0x4a0] sm:$0xff]  ;;  %v1391_v8 = vld [vmem:[#allocation5 + $0x4b0] sm:$0xff] }
 0x348   : > { %2378 = vmatpush1.bf16.msra.mxu1 %v2377_v14 }
 0x349   : > { %2380 = vmatprep.subr.bf16.mxu1 %v2379_v15 }
 0x34c   : > { %2382 = vmatpush1.bf16.msra.mxu1 %v2381_v20  ;;  %v1277_v20 = vld [vmem:[#allocation2 + $0x5d8] sm:$0xff] }
 0x34d   : > { %2384 = vmatprep.subr.bf16.mxu1 %v2383_v21  ;;  %v2415_v21 = vpack.c.bf16 %v1277_v20, %v1275_v19  ;;  %v1397_v19 = vld [vmem:[#allocation5 + $0x4e0] sm:$0xff]  ;;  %v1399_v20 = vld [vmem:[#allocation5 + $0x4f0] sm:$0xff] }
 0x34e   : > { %v2453_v23 = vpack.c.bf16 %v1399_v20, %v1397_v19  ;;  %v1522_v20 = vld [vmem:[#allocation7 + $0x8] sm:$0xff] }
 0x350   : > { %2386 = vmatpush1.bf16.msra.mxu1 %v2385_v26  ;;  %v1281_v26 = vld [vmem:[#allocation2 + $0x5f8] sm:$0xff] }
 0x351   : > { %2388 = vmatprep.subr.bf16.mxu1 %v2387_v27  ;;  %v2419_v27 = vpack.c.bf16 %v1281_v26, %v1279_v25  ;;  %v1401_v25 = vld [vmem:[#allocation5 + $0x500] sm:$0xff]  ;;  %v1403_v26 = vld [vmem:[#allocation5 + $0x510] sm:$0xff] }
 0x352   : > { %v2457_v29 = vpack.c.bf16 %v1403_v26, %v1401_v25  ;;  %v1526_v25 = vld [vmem:[#allocation7 + $0x28] sm:$0xff]  ;;  %v1528_v26 = vld [vmem:[#allocation7 + $0x38] sm:$0xff] }
 0x354   : > { %2390 = vmatpush1.bf16.msra.mxu1 %v2389_v36  ;;  %v1372_v36 = vld [vmem:[#allocation5 + $0x418] sm:$0xff] }
 0x355   : > { %2392 = vmatprep.subr.bf16.mxu1 %v2391_v37  ;;  %v1369_v37 = vld [vmem:[#allocation5 + $0x400] sm:$0xff]  ;;  %v2423_v52 = vpack.c.bf16 %v1372_v36, %v1370_v35  ;;  %v1407_v36 = vld [vmem:[#allocation5 + $0x530] sm:$0xff] }
 0x356   : > { %v1405_v35 = vld [vmem:[#allocation5 + $0x520] sm:$0xff] }
 0x357   : > { %2424 = vmatprep.subr.bf16.mxu0 %v2423_v52  ;;  %v1412_v52 = vld [vmem:[#allocation5 + $0x558] sm:$0xff] }
 0x358   : > { %2394 = vmatpush1.bf16.msra.mxu1 %v2393_v55  ;;  %v2425_v55 = vpack.c.bf16 %v1371_v56, %v1369_v37  ;;  %v1410_v37 = vld [vmem:[#allocation5 + $0x548] sm:$0xff]  ;;  %v2461_v56 = vpack.c.bf16 %v1407_v36, %v1405_v35  ;;  %v1532_v36 = vld [vmem:[#allocation7 + $0x58] sm:$0xff] }
 0x359   : > { %2396 = vmatprep.subr.bf16.mxu1 %v2395_v39  ;;  %v2427_v39 = vpack.c.bf16 %v1376_v54, %v1374_v38  ;;  %v2463_v38 = vpack.c.bf16 %v1412_v52, %v1410_v37  ;;  %v1409_v54 = vld [vmem:[#allocation5 + $0x540] sm:$0xff]  ;;  %v1530_v35 = vld [vmem:[#allocation7 + $0x48] sm:$0xff] }
 0x35a   : > { %v2495_v52 = vpack.c.bf16 %v1532_v36, %v1530_v35  ;;  %v1565_v36 = vld [vmem:[#allocation7 + $0x160] sm:$0xff] }
 0x35c   : > { %2398 = vmatpush1.bf16.msra.mxu1 %v2397_v44  ;;  %v2429_v44 = vpack.c.bf16 %v1375_v41, %v1373_v40  ;;  %v1416_v40 = vld [vmem:[#allocation5 + $0x578] sm:$0xff] }
 0x35d   : > { %2400 = vmatprep.subr.bf16.mxu1 %v2399_v45  ;;  %v2431_v45 = vpack.c.bf16 %v1380_v43, %v1378_v42  ;;  %v1413_v43 = vld [vmem:[#allocation5 + $0x560] sm:$0xff] }
 0x360   : > { %2402 = vmatpush1.bf16.msra.mxu1 %v2401_v53  ;;  %v2433_v53 = vpack.c.bf16 %v1379_v49, %v1377_v47  ;;  %v1420_v47 = vld [vmem:[#allocation5 + $0x598] sm:$0xff] }
 0x361   : > { %2404 = vmatprep.subr.bf16.mxu1 %v2403_v57  ;;  %v2435_v57 = vpack.c.bf16 %v1384_v51, %v1382_v50  ;;  %v1417_v51 = vld [vmem:[#allocation5 + $0x580] sm:$0xff] }
 0x364   : > { %2406 = vmatpush1.bf16.msra.mxu1 %v2405_v62  ;;  %v2437_v62 = vpack.c.bf16 %v1383_v59, %v1381_v58  ;;  %v1424_v58 = vld [vmem:[#allocation5 + $0x5b8] sm:$0xff] }
 0x365   : > { %2408 = vmatprep.subr.bf16.mxu1 %v2407_v63  ;;  %v2439_v63 = vpack.c.bf16 %v1388_v61, %v1386_v60  ;;  %v1421_v61 = vld [vmem:[#allocation5 + $0x5a0] sm:$0xff] }
 0x368   : > { %2410 = vmatpush1.bf16.msra.mxu1 %v2409_v5  ;;  %v2441_v5 = vpack.c.bf16 %v1387_v2, %v1385_v1  ;;  %v1428_v1 = vld [vmem:[#allocation5 + $0x5d8] sm:$0xff] }
 0x369   : > { %2412 = vmatprep.subr.bf16.mxu1 %v2411_v6  ;;  %v2443_v6 = vpack.c.bf16 %v1392_v4, %v1390_v3  ;;  %v2026_v4 = vld [vmem:[%s3495_s6 + $0x2] sm:$0x3] }
 0x36c   : > { %2414 = vmatpush1.bf16.msra.mxu1 %v2413_v9  ;;  %v1394_v9 = vld [vmem:[#allocation5 + $0x4c8] sm:$0xff] }
 0x36d   : > { %2416 = vmatprep.subr.bf16.mxu1 %v2415_v21  ;;  %v1402_v21 = vld [vmem:[#allocation5 + $0x508] sm:$0xff] }
 0x370   : > { %2418 = vmatpush1.bf16.msra.mxu1 %v2417_v24  ;;  %v2455_v24 = vpack.c.bf16 %v1404_v22, %v1402_v21  ;;  %v1524_v21 = vld [vmem:[#allocation7 + $0x18] sm:$0xff]  ;;  %v1521_v22 = vld [vmem:[#allocation7] sm:$0xff] }
 0x371   : > { %2420 = vmatprep.subr.bf16.mxu1 %v2419_v27  ;;  %v1406_v27 = vld [vmem:[#allocation5 + $0x528] sm:$0xff] }
 0x374   : > { %2422 = vmatpush1.bf16.msra.mxu1 %v2421_v30  ;;  %v2459_v30 = vpack.c.bf16 %v1408_v28, %v1406_v27  ;;  %v2491_v28 = vpack.c.bf16 %v1528_v26, %v1526_v25  ;;  %v1561_v26 = vld [vmem:[#allocation7 + $0x140] sm:$0xff] }
 0x40a   : > { %v1057_v13 = vpop.f32.mrb[2].mxu1 }
 0x40b   : > { %v1058_v14 = vadd.f32 %v1057_v13, %v984_v11  ;;  %v1059_v15 = vpop.f32.mrb[3].mxu1  ;;  %v2445_v11 = vpack.c.bf16 %v1391_v8, %v1389_v7  ;;  %v1393_v13 = vld [vmem:[#allocation5 + $0x4c0] sm:$0xff] }
 0x40c   : > { %v1060_v16 = vadd.f32 %v1059_v15, %v988_v12  ;;  %v2447_v12 = vpack.c.bf16 %v1396_v10, %v1394_v9  ;;  %v1398_v15 = vld [vmem:[#allocation5 + $0x4e8] sm:$0xff] }
 0x40d   : > { %v1062_v18 = vmax.f32 %v1058_v14, 0.0  ;;  %v1395_v14 = vld [vmem:[#allocation5 + $0x4d0] sm:$0xff] }
 0x40e   : > { %v1063_v17 = vmax.f32 %v1060_v16, 0.0  ;;  %v1400_v16 = vld [vmem:[#allocation5 + $0x4f8] sm:$0xff] }
 0x410   : > { %1206 = vmatprep.mubr.f32.mxu0 %v1063_v17  ;;  %v2449_v17 = vpack.c.bf16 %v1395_v14, %v1393_v13 }
 0x411   : > { %1207 = vmatmul.mubr.f32.vlgmr.msra.gmra.mrb[4].mxu0 %v1062_v18  ;;  %v2451_v18 = vpack.c.bf16 %v1400_v16, %v1398_v15  ;;  %v1425_v15 = vld [vmem:[#allocation5 + $0x5c0] sm:$0xff]  ;;  %v1427_v16 = vld [vmem:[#allocation5 + $0x5d0] sm:$0xff] }
 0x412   : > { %2426 = vmatpush1.bf16.msra.mxu0 %v2425_v55  ;;  %v1411_v55 = vld [vmem:[#allocation5 + $0x550] sm:$0xff] }
 0x413   : > { %2428 = vmatprep.subr.bf16.mxu0 %v2427_v39  ;;  %v1414_v39 = vld [vmem:[#allocation5 + $0x568] sm:$0xff]  ;;  %v2465_v41 = vpack.c.bf16 %v1411_v55, %v1409_v54  ;;  %v1536_v55 = vld [vmem:[#allocation7 + $0x78] sm:$0xff] }
 0x414   : > { %v2467_v42 = vpack.c.bf16 %v1416_v40, %v1414_v39  ;;  %v1534_v54 = vld [vmem:[#allocation7 + $0x68] sm:$0xff] }
 0x415   : > { %v2499_v40 = vpack.c.bf16 %v1536_v55, %v1534_v54  ;;  %v1569_v55 = vld [vmem:[#allocation7 + $0x180] sm:$0xff] }
 0x416   : > { %2430 = vmatpush1.bf16.msra.mxu0 %v2429_v44  ;;  %v1415_v44 = vld [vmem:[#allocation5 + $0x570] sm:$0xff] }
 0x417   : > { %2432 = vmatprep.subr.bf16.mxu0 %v2431_v45  ;;  %v1418_v45 = vld [vmem:[#allocation5 + $0x588] sm:$0xff]  ;;  %v2469_v49 = vpack.c.bf16 %v1415_v44, %v1413_v43  ;;  %v1540_v44 = vld [vmem:[#allocation7 + $0x98] sm:$0xff] }
 0x418   : > { %v2471_v50 = vpack.c.bf16 %v1420_v47, %v1418_v45  ;;  %v1538_v43 = vld [vmem:[#allocation7 + $0x88] sm:$0xff] }
 0x419   : > { %v2503_v47 = vpack.c.bf16 %v1540_v44, %v1538_v43  ;;  %v1573_v44 = vld [vmem:[#allocation7 + $0x1a0] sm:$0xff] }
 0x41a   : > { %2434 = vmatpush1.bf16.msra.mxu0 %v2433_v53  ;;  %v1419_v53 = vld [vmem:[#allocation5 + $0x590] sm:$0xff] }
 0x41b   : > { %2436 = vmatprep.subr.bf16.mxu0 %v2435_v57  ;;  %v1422_v57 = vld [vmem:[#allocation5 + $0x5a8] sm:$0xff]  ;;  %v2473_v59 = vpack.c.bf16 %v1419_v53, %v1417_v51  ;;  %v1544_v53 = vld [vmem:[#allocation7 + $0xb8] sm:$0xff] }
 0x41c   : > { %v2475_v60 = vpack.c.bf16 %v1424_v58, %v1422_v57  ;;  %v1542_v51 = vld [vmem:[#allocation7 + $0xa8] sm:$0xff] }
 0x41d   : > { %v2507_v58 = vpack.c.bf16 %v1544_v53, %v1542_v51 }
 0x41e   : > { %2438 = vmatpush1.bf16.msra.mxu0 %v2437_v62  ;;  %v1423_v62 = vld [vmem:[#allocation5 + $0x5b0] sm:$0xff] }
 0x41f   : > { %2440 = vmatprep.subr.bf16.mxu0 %v2439_v63  ;;  %v1426_v63 = vld [vmem:[#allocation5 + $0x5c8] sm:$0xff]  ;;  %v2477_v2 = vpack.c.bf16 %v1423_v62, %v1421_v61  ;;  %v1548_v62 = vld [vmem:[#allocation7 + $0xd8] sm:$0xff] }
 0x420   : > { %v2479_v3 = vpack.c.bf16 %v1428_v1, %v1426_v63  ;;  %v1546_v61 = vld [vmem:[#allocation7 + $0xc8] sm:$0xff] }
 0x421   : > { %v2511_v1 = vpack.c.bf16 %v1548_v62, %v1546_v61  ;;  %v1578_v62 = vld [vmem:[#allocation7 + $0x1c8] sm:$0xff] }
 0x422   : > { %2442 = vmatpush1.bf16.msra.mxu0 %v2441_v5  ;;  %v1135_v5 = vrot.slane %v2026_v4, %v3251_v46 }
 0x423   : > { %2444 = vmatprep.subr.bf16.mxu0 %v2443_v6  ;;  %v1139_v6 = vrot.slane %v2026_v4, %v3256_v48  ;;  %v1550_v4 = vld [vmem:[#allocation7 + $0xe8] sm:$0xff] }
 0x426   : > { %2446 = vmatpush1.bf16.msra.mxu0 %v2445_v11 }
 0x427   : > { %2448 = vmatprep.subr.bf16.mxu0 %v2447_v12 }
 0x42a   : > { %2450 = vmatpush1.bf16.msra.mxu0 %v2449_v17  ;;  %v2481_v17 = vpack.c.bf16 %v1427_v16, %v1425_v15  ;;  %v1556_v15 = vld [vmem:[#allocation7 + $0x118] sm:$0xff] }
 0x42b   : > { %2452 = vmatprep.subr.bf16.mxu0 %v2451_v18 }
 0x42e   : > { %2454 = vmatpush1.bf16.msra.mxu0 %v2453_v23  ;;  %v2487_v23 = vpack.c.bf16 %v1524_v21, %v1522_v20  ;;  %v1557_v20 = vld [vmem:[#allocation7 + $0x120] sm:$0xff]  ;;  %v1559_v21 = vld [vmem:[#allocation7 + $0x130] sm:$0xff] }
 0x42f   : > { %2456 = vmatprep.subr.bf16.mxu0 %v2455_v24  ;;  %v1523_v24 = vld [vmem:[#allocation7 + $0x10] sm:$0xff] }
 0x430   : > { %v2489_v27 = vpack.c.bf16 %v1523_v24, %v1521_v22  ;;  %2488 = vmatprep.subr.bf16.mxu1 %v2487_v23  ;;  %v1562_v22 = vld [vmem:[#allocation7 + $0x148] sm:$0xff]  ;;  %v1564_v23 = vld [vmem:[#allocation7 + $0x158] sm:$0xff]  ;;  %v2525_v24 = vpack.c.bf16 %v1559_v21, %v1557_v20  ;;  %v1670_v20 = vld [vmem:[#allocation8 + $0x10] sm:$0xff] }
 0x431   : > { %v2527_v25 = vpack.c.bf16 %v1564_v23, %v1562_v22  ;;  %v1671_v21 = vld [vmem:[#allocation8 + $0x18] sm:$0xff]  ;;  %v1688_v22 = vld [vmem:[#allocation8 + $0xa0] sm:$0xff]  ;;  %v1689_v23 = vld [vmem:[#allocation8 + $0xa8] sm:$0xff] }
 0x432   : > { %2458 = vmatpush1.bf16.msra.mxu0 %v2457_v29  ;;  %v1525_v29 = vld [vmem:[#allocation7 + $0x20] sm:$0xff] }
 0x433   : > { %2460 = vmatprep.subr.bf16.mxu0 %v2459_v30  ;;  %v1527_v30 = vld [vmem:[#allocation7 + $0x30] sm:$0xff] }
 0x434   : > { %v2493_v37 = vpack.c.bf16 %v1527_v30, %v1525_v29  ;;  %v1568_v29 = vld [vmem:[#allocation7 + $0x178] sm:$0xff] }
 0x436   : > { %2462 = vmatpush1.bf16.msra.mxu0 %v2461_v56  ;;  %v1529_v56 = vld [vmem:[#allocation7 + $0x40] sm:$0xff] }
 0x437   : > { %2464 = vmatprep.subr.bf16.mxu0 %v2463_v38  ;;  %v1531_v38 = vld [vmem:[#allocation7 + $0x50] sm:$0xff] }
 0x438   : > { %v2497_v39 = vpack.c.bf16 %v1531_v38, %v1529_v56  ;;  %v1572_v56 = vld [vmem:[#allocation7 + $0x198] sm:$0xff] }
 0x43a   : > { %2466 = vmatpush1.bf16.msra.mxu0 %v2465_v41  ;;  %v1533_v41 = vld [vmem:[#allocation7 + $0x60] sm:$0xff] }
 0x43b   : > { %2468 = vmatprep.subr.bf16.mxu0 %v2467_v42  ;;  %v1535_v42 = vld [vmem:[#allocation7 + $0x70] sm:$0xff] }
 0x43c   : > { %v2501_v45 = vpack.c.bf16 %v1535_v42, %v1533_v41  ;;  %v1576_v41 = vld [vmem:[#allocation7 + $0x1b8] sm:$0xff] }
 0x43e   : > { %2470 = vmatpush1.bf16.msra.mxu0 %v2469_v49  ;;  %v1537_v49 = vld [vmem:[#allocation7 + $0x80] sm:$0xff] }
 0x43f   : > { %2472 = vmatprep.subr.bf16.mxu0 %v2471_v50  ;;  %v1539_v50 = vld [vmem:[#allocation7 + $0x90] sm:$0xff] }
 0x440   : > { %v2505_v57 = vpack.c.bf16 %v1539_v50, %v1537_v49  ;;  %v2027_v49 = vld [vmem:[%s3493_s4 + $0x4] sm:$0x3] }
 0x441   : > { %v1288_v50 = vrot.slane %v2027_v49, %v3251_v46  ;;  %v1292_v51 = vrot.slane %v2027_v49, %v3256_v48  ;;  %v1697_v49 = vld [vmem:[#allocation8 + $0xe8] sm:$0xff] }
 0x442   : > { %2474 = vmatpush1.bf16.msra.mxu0 %v2473_v59  ;;  %v1541_v59 = vld [vmem:[#allocation7 + $0xa0] sm:$0xff] }
 0x443   : > { %2476 = vmatprep.subr.bf16.mxu0 %v2475_v60  ;;  %v1543_v60 = vld [vmem:[#allocation7 + $0xb0] sm:$0xff] }
 0x444   : > { %v2509_v63 = vpack.c.bf16 %v1543_v60, %v1541_v59 }
 0x446   : > { %2478 = vmatpush1.bf16.msra.mxu0 %v2477_v2  ;;  %v1545_v2 = vld [vmem:[#allocation7 + $0xc0] sm:$0xff] }
 0x447   : > { %2480 = vmatprep.subr.bf16.mxu0 %v2479_v3  ;;  %v1547_v3 = vld [vmem:[#allocation7 + $0xd0] sm:$0xff] }
 0x44a   : > { %2482 = vmatpush1.bf16.msra.mxu0 %v2481_v17 }
 0x4e4   : > { %v1208_v7 = vpop.f32.mrb[4].mxu0 }
 0x4e5   : > { %v1209_v8 = vadd.f32 %v1208_v7, %v1135_v5  ;;  %v1210_v9 = vpop.f32.mrb[5].mxu0  ;;  %v1552_v5 = vld [vmem:[#allocation7 + $0xf8] sm:$0xff] }
 0x4e6   : > { %v1211_v10 = vadd.f32 %v1210_v9, %v1139_v6  ;;  %v2513_v6 = vpack.c.bf16 %v1547_v3, %v1545_v2  ;;  %v2515_v7 = vpack.c.bf16 %v1552_v5, %v1550_v4  ;;  %v1551_v9 = vld [vmem:[#allocation7 + $0xf0] sm:$0xff]  ;;  %v1577_v2 = vld [vmem:[#allocation7 + $0x1c0] sm:$0xff]  ;;  %v1582_v5 = vld [vmem:[#allocation7 + $0x1e8] sm:$0xff] }
 0x4e7   : > { %v3306_v11 = vadd.f32 %v1209_v8, %v911_v34  ;;  %v1432_v34 = vld [vmem:[#allocation5 + $0x5f8] sm:$0xff]  ;;  %v1549_v8 = vld [vmem:[#allocation7 + $0xe0] sm:$0xff]  ;;  %v1579_v3 = vld [vmem:[#allocation7 + $0x1d0] sm:$0xff] }
 0x4e8   : > { %v3310_v12 = vadd.f32 %v1211_v10, %v912_v33  ;;  %v2483_v18 = vpack.c.bf16 %v1432_v34, %v1430_v31  ;;  %v1431_v33 = vld [vmem:[#allocation5 + $0x5f0] sm:$0xff]  ;;  %v1554_v10 = vld [vmem:[#allocation7 + $0x108] sm:$0xff]  ;;  %v2517_v16 = vpack.c.bf16 %v1551_v9, %v1549_v8  ;;  %v1553_v31 = vld [vmem:[#allocation7 + $0x100] sm:$0xff]  ;;  %v2545_v4 = vpack.c.bf16 %v1579_v3, %v1577_v2 }
 0x4e9   : > { %v1215_v14 = vmax.f32 %v3306_v11, 0.0  ;;  %v2485_v19 = vpack.c.bf16 %v1431_v33, %v1429_v32  ;;  %v2519_v17 = vpack.c.bf16 %v1556_v15, %v1554_v10  ;;  %v1555_v34 = vld [vmem:[#allocation7 + $0x110] sm:$0xff]  ;;  %v1560_v32 = vld [vmem:[#allocation7 + $0x138] sm:$0xff]  ;;  %v1581_v8 = vld [vmem:[#allocation7 + $0x1e0] sm:$0xff] }
 0x4ea   : > { %v1216_v13 = vmax.f32 %v3310_v12, 0.0  ;;  %2484 = vmatprep.subr.bf16.mxu0 %v2483_v18  ;;  %v1558_v18 = vld [vmem:[#allocation7 + $0x128] sm:$0xff]  ;;  %v2521_v33 = vpack.c.bf16 %v1555_v34, %v1553_v31  ;;  %v1583_v9 = vld [vmem:[#allocation7 + $0x1f0] sm:$0xff]  ;;  %v1684_v15 = vld [vmem:[#allocation8 + $0x80] sm:$0xff] }
 0x4eb   : > { %2486 = vmatpush1.bf16.msra.mxu0 %v2485_v19  ;;  %v2523_v19 = vpack.c.bf16 %v1560_v32, %v1558_v18  ;;  %v2549_v10 = vpack.c.bf16 %v1583_v9, %v1581_v8  ;;  %v1669_v34 = vld [vmem:[#allocation8 + $0x8] sm:$0xff]  ;;  %v1686_v18 = vld [vmem:[#allocation8 + $0x90] sm:$0xff]  ;;  %v1687_v32 = vld [vmem:[#allocation8 + $0x98] sm:$0xff] }
 0x4ec   : > { %1359 = vmatprep.mubr.f32.mxu1 %v1216_v13  ;;  %v1699_v8 = vld [vmem:[#allocation8 + $0xf8] sm:$0xff]  ;;  %v1779_v11 = vld [vmem:[%s3500_s11 + $0x8] sm:$0xff] }
 0x4ed   : > { %1360 = vmatmul.mubr.f32.vlgmr.msra.gmra.mrb[4].mxu1 %v1215_v14  ;;  %v1781_v12 = vld [vmem:[%s3500_s11 + $0x18] sm:$0xff] }
 0x4ee   : > { %2490 = vmatpush1.bf16.msra.mxu1 %v2489_v27  ;;  %v1563_v27 = vld [vmem:[#allocation7 + $0x150] sm:$0xff] }
 0x4ef   : > { %2492 = vmatprep.subr.bf16.mxu1 %v2491_v28  ;;  %v1566_v28 = vld [vmem:[#allocation7 + $0x168] sm:$0xff]  ;;  %v2529_v30 = vpack.c.bf16 %v1563_v27, %v1561_v26  ;;  %v1672_v26 = vld [vmem:[#allocation8 + $0x20] sm:$0xff] }
 0x4f0   : > { %v2531_v35 = vpack.c.bf16 %v1568_v29, %v1566_v28  ;;  %v1673_v27 = vld [vmem:[#allocation8 + $0x28] sm:$0xff]  ;;  %v1690_v28 = vld [vmem:[#allocation8 + $0xb0] sm:$0xff]  ;;  %v1691_v29 = vld [vmem:[#allocation8 + $0xb8] sm:$0xff] }
 0x4f2   : > { %2494 = vmatpush1.bf16.msra.mxu1 %v2493_v37  ;;  %v1567_v37 = vld [vmem:[#allocation7 + $0x170] sm:$0xff] }
 0x4f3   : > { %2496 = vmatprep.subr.bf16.mxu1 %v2495_v52  ;;  %v1570_v52 = vld [vmem:[#allocation7 + $0x188] sm:$0xff]  ;;  %v2533_v38 = vpack.c.bf16 %v1567_v37, %v1565_v36  ;;  %v1674_v36 = vld [vmem:[#allocation8 + $0x30] sm:$0xff]  ;;  %v1675_v37 = vld [vmem:[#allocation8 + $0x38] sm:$0xff] }
 0x4f4   : > { %v2535_v54 = vpack.c.bf16 %v1572_v56, %v1570_v52  ;;  %v1692_v52 = vld [vmem:[#allocation8 + $0xc0] sm:$0xff]  ;;  %v1693_v56 = vld [vmem:[#allocation8 + $0xc8] sm:$0xff] }
 0x4f6   : > { %2498 = vmatpush1.bf16.msra.mxu1 %v2497_v39  ;;  %v1571_v39 = vld [vmem:[#allocation7 + $0x190] sm:$0xff] }
 0x4f7   : > { %2500 = vmatprep.subr.bf16.mxu1 %v2499_v40  ;;  %v1574_v40 = vld [vmem:[#allocation7 + $0x1a8] sm:$0xff]  ;;  %v2537_v42 = vpack.c.bf16 %v1571_v39, %v1569_v55  ;;  %v1676_v55 = vld [vmem:[#allocation8 + $0x40] sm:$0xff] }
 0x4f8   : > { %v2539_v43 = vpack.c.bf16 %v1576_v41, %v1574_v40  ;;  %v1677_v39 = vld [vmem:[#allocation8 + $0x48] sm:$0xff]  ;;  %v1694_v40 = vld [vmem:[#allocation8 + $0xd0] sm:$0xff]  ;;  %v1695_v41 = vld [vmem:[#allocation8 + $0xd8] sm:$0xff] }
 0x4fa   : > { %2502 = vmatpush1.bf16.msra.mxu1 %v2501_v45  ;;  %v1575_v45 = vld [vmem:[#allocation7 + $0x1b0] sm:$0xff] }
 0x4fb   : > { %2504 = vmatprep.subr.bf16.mxu1 %v2503_v47  ;;  %v2541_v47 = vpack.c.bf16 %v1575_v45, %v1573_v44  ;;  %v1678_v44 = vld [vmem:[#allocation8 + $0x50] sm:$0xff]  ;;  %v1679_v45 = vld [vmem:[#allocation8 + $0x58] sm:$0xff] }
 0x4fe   : > { %2506 = vmatpush1.bf16.msra.mxu1 %v2505_v57 }
 0x4ff   : > { %2508 = vmatprep.subr.bf16.mxu1 %v2507_v58 }
 0x502   : > { %2510 = vmatpush1.bf16.msra.mxu1 %v2509_v63  ;;  %v1580_v63 = vld [vmem:[#allocation7 + $0x1d8] sm:$0xff] }
 0x503   : > { %2512 = vmatprep.subr.bf16.mxu1 %v2511_v1  ;;  %v2543_v1 = vpack.c.bf16 %v1580_v63, %v1578_v62 }
 0x506   : > { %2514 = vmatpush1.bf16.msra.mxu1 %v2513_v6  ;;  %v1584_v6 = vld [vmem:[#allocation7 + $0x1f8] sm:$0xff] }
 0x507   : > { %2516 = vmatprep.subr.bf16.mxu1 %v2515_v7  ;;  %v2547_v7 = vpack.c.bf16 %v1584_v6, %v1582_v5 }
 0x50a   : > { %2518 = vmatpush1.bf16.msra.mxu1 %v2517_v16  ;;  %v1685_v16 = vld [vmem:[#allocation8 + $0x88] sm:$0xff] }
 0x50b   : > { %2520 = vmatprep.subr.bf16.mxu1 %v2519_v17  ;;  %v1668_v17 = vld [vmem:[#allocation8] sm:$0xff]  ;;  %v2551_v31 = vpack.c.bf16 %v1685_v16, %v1684_v15  ;;  %v1683_v15 = vld [vmem:[#allocation8 + $0x78] sm:$0xff] }
 0x50d   : > { %2552 = vmatprep.subr.bf16.mxu0 %v2551_v31 }
 0x50e   : > { %2522 = vmatpush1.bf16.msra.mxu1 %v2521_v33  ;;  %v2553_v33 = vpack.c.bf16 %v1669_v34, %v1668_v17  ;;  %v1778_v34 = vld [vmem:[%s3500_s11] sm:$0xff] }
 0x50f   : > { %2524 = vmatprep.subr.bf16.mxu1 %v2523_v19  ;;  %v2555_v19 = vpack.c.bf16 %v1687_v32, %v1686_v18  ;;  %v1780_v18 = vld [vmem:[%s3500_s11 + $0x10] sm:$0xff] }
 0x512   : > { %2526 = vmatpush1.bf16.msra.mxu1 %v2525_v24  ;;  %v2557_v24 = vpack.c.bf16 %v1671_v21, %v1670_v20 }
 0x513   : > { %2528 = vmatprep.subr.bf16.mxu1 %v2527_v25  ;;  %v2559_v25 = vpack.c.bf16 %v1689_v23, %v1688_v22  ;;  %v2585_v22 = vpack.c.bf16 %v1780_v18, %v1778_v34 }
 0x516   : > { %2530 = vmatpush1.bf16.msra.mxu1 %v2529_v30  ;;  %v2561_v30 = vpack.c.bf16 %v1673_v27, %v1672_v26  ;;  %v1784_v26 = vld [vmem:[%s3500_s11 + $0x30] sm:$0xff]  ;;  %v1787_v27 = vld [vmem:[%s3500_s11 + $0x48] sm:$0xff] }
 0x517   : > { %2532 = vmatprep.subr.bf16.mxu1 %v2531_v35  ;;  %v2563_v35 = vpack.c.bf16 %v1691_v29, %v1690_v28  ;;  %v1789_v28 = vld [vmem:[%s3500_s11 + $0x58] sm:$0xff] }
 0x51a   : > { %2534 = vmatpush1.bf16.msra.mxu1 %v2533_v38  ;;  %v2565_v38 = vpack.c.bf16 %v1675_v37, %v1674_v36  ;;  %v1788_v36 = vld [vmem:[%s3500_s11 + $0x50] sm:$0xff]  ;;  %v1791_v37 = vld [vmem:[%s3500_s11 + $0x68] sm:$0xff] }
 0x51b   : > { %2536 = vmatprep.subr.bf16.mxu1 %v2535_v54  ;;  %v2567_v54 = vpack.c.bf16 %v1693_v56, %v1692_v52  ;;  %v1793_v52 = vld [vmem:[%s3500_s11 + $0x78] sm:$0xff] }
 0x51c   : > { %v2595_v56 = vpack.c.bf16 %v1793_v52, %v1791_v37 }
 0x51e   : > { %2538 = vmatpush1.bf16.msra.mxu1 %v2537_v42  ;;  %v2569_v42 = vpack.c.bf16 %v1677_v39, %v1676_v55  ;;  %v1795_v55 = vld [vmem:[%s3500_s11 + $0x88] sm:$0xff]  ;;  %v1797_v39 = vld [vmem:[%s3500_s11 + $0x98] sm:$0xff] }
 0x51f   : > { %2540 = vmatprep.subr.bf16.mxu1 %v2539_v43  ;;  %v2571_v43 = vpack.c.bf16 %v1695_v41, %v1694_v40  ;;  %v2599_v41 = vpack.c.bf16 %v1797_v39, %v1795_v55 }
 0x522   : > { %2542 = vmatpush1.bf16.msra.mxu1 %v2541_v47  ;;  %v1696_v47 = vld [vmem:[#allocation8 + $0xe0] sm:$0xff] }
 0x523   : > { %2544 = vmatprep.subr.bf16.mxu1 %v2543_v1 }
 0x526   : > { %2546 = vmatpush1.bf16.msra.mxu1 %v2545_v4 }
 0x527   : > { %2548 = vmatprep.subr.bf16.mxu1 %v2547_v7  ;;  %v1698_v7 = vld [vmem:[#allocation8 + $0xf0] sm:$0xff] }
 0x528   : > { %v2579_v9 = vpack.c.bf16 %v1699_v8, %v1698_v7  ;;  %v2029_v7 = vld [vmem:[%s3499_s10] ss:$0 sm:$0xff] }
 0x52a   : > { %2550 = vmatpush1.bf16.msra.mxu1 %v2549_v10  ;;  %v1682_v10 = vld [vmem:[#allocation8 + $0x70] sm:$0xff] }
 0x52b   : > { %v2581_v16 = vpack.c.bf16 %v1683_v15, %v1682_v10 }
 0x5c0   : > { %v1361_v53 = vpop.f32.mrb[4].mxu1 }
 0x5c1   : > { %v1362_v57 = vadd.f32 %v1361_v53, %v1288_v50  ;;  %v1363_v58 = vpop.f32.mrb[5].mxu1  ;;  %v2573_v50 = vpack.c.bf16 %v1679_v45, %v1678_v44  ;;  %v1680_v53 = vld [vmem:[#allocation8 + $0x60] sm:$0xff]  ;;  %v1799_v44 = vld [vmem:[%s3500_s11 + $0xa8] sm:$0xff]  ;;  %v1801_v45 = vld [vmem:[%s3500_s11 + $0xb8] sm:$0xff] }
 0x5c2   : > { %v1364_v59 = vadd.f32 %v1363_v58, %v1292_v51  ;;  %v2575_v51 = vpack.c.bf16 %v1697_v49, %v1696_v47  ;;  %v2603_v49 = vpack.c.bf16 %v1801_v45, %v1799_v44 }
 0x5c3   : > { %v1366_v61 = vmax.f32 %v1362_v57, 0.0  ;;  %v1681_v57 = vld [vmem:[#allocation8 + $0x68] sm:$0xff] }
 0x5c4   : > { %v1367_v60 = vmax.f32 %v1364_v59, 0.0  ;;  %v2577_v58 = vpack.c.bf16 %v1681_v57, %v1680_v53  ;;  %v2028_v59 = vld [vmem:[%s3495_s6 + $0x4] sm:$0x3]  ;;  %v1803_v57 = vld [vmem:[%s3500_s11 + $0xc8] sm:$0xff] }
 0x5c6   : > { %1510 = vmatprep.mubr.f32.mxu0 %v1367_v60  ;;  %v1439_v60 = vrot.slane %v2028_v59, %v3251_v46 }
 0x5c7   : > { %1511 = vmatmul.mubr.f32.vlgmr.msra.gmra.mrb[6].mxu0 %v1366_v61  ;;  %v1443_v61 = vrot.slane %v2028_v59, %v3256_v48 }
 0x5c8   : > { %2554 = vmatpush3.bf16.msra.mxu0 %v2553_v33  ;;  %v1783_v33 = vld [vmem:[%s3500_s11 + $0x28] sm:$0xff] }
 0x5c9   : > { %2556 = vmatprep.subr.bf16.mxu0 %v2555_v19  ;;  %v1785_v19 = vld [vmem:[%s3500_s11 + $0x38] sm:$0xff] }
 0x5cc   : > { %2558 = vmatpush3.bf16.msra.mxu0 %v2557_v24  ;;  %v2587_v24 = vpack.c.bf16 %v1785_v19, %v1783_v33 }
 0x5cd   : > { %2560 = vmatprep.subr.bf16.mxu0 %v2559_v25  ;;  %v1782_v25 = vld [vmem:[%s3500_s11 + $0x20] sm:$0xff] }
 0x5ce   : > { %v2589_v29 = vpack.c.bf16 %v1784_v26, %v1782_v25 }
 0x5d0   : > { %2562 = vmatpush3.bf16.msra.mxu0 %v2561_v30  ;;  %v2591_v30 = vpack.c.bf16 %v1789_v28, %v1787_v27 }
 0x5d1   : > { %2564 = vmatprep.subr.bf16.mxu0 %v2563_v35  ;;  %v1786_v35 = vld [vmem:[%s3500_s11 + $0x40] sm:$0xff] }
 0x5d4   : > { %2566 = vmatpush3.bf16.msra.mxu0 %v2565_v38  ;;  %v1790_v38 = vld [vmem:[%s3500_s11 + $0x60] sm:$0xff] }
 0x5d5   : > { %2568 = vmatprep.subr.bf16.mxu0 %v2567_v54  ;;  %v1792_v54 = vld [vmem:[%s3500_s11 + $0x70] sm:$0xff] }
 0x5d6   : > { %v2597_v40 = vpack.c.bf16 %v1792_v54, %v1790_v38 }
 0x5d8   : > { %2570 = vmatpush3.bf16.msra.mxu0 %v2569_v42  ;;  %v1794_v42 = vld [vmem:[%s3500_s11 + $0x80] sm:$0xff] }
 0x5d9   : > { %2572 = vmatprep.subr.bf16.mxu0 %v2571_v43  ;;  %v1796_v43 = vld [vmem:[%s3500_s11 + $0x90] sm:$0xff] }
 0x5da   : > { %v2601_v47 = vpack.c.bf16 %v1796_v43, %v1794_v42 }
 0x5dc   : > { %2574 = vmatpush3.bf16.msra.mxu0 %v2573_v50  ;;  %v1798_v50 = vld [vmem:[%s3500_s11 + $0xa0] sm:$0xff] }
 0x5dd   : > { %2576 = vmatprep.subr.bf16.mxu0 %v2575_v51  ;;  %v1800_v51 = vld [vmem:[%s3500_s11 + $0xb0] sm:$0xff] }
 0x5de   : > { %v2605_v53 = vpack.c.bf16 %v1800_v51, %v1798_v50 }
 0x5e0   : > { %2578 = vmatpush3.bf16.msra.mxu0 %v2577_v58  ;;  %v1805_v58 = vld [vmem:[%s3500_s11 + $0xd8] sm:$0xff] }
 0x5e1   : > { %2580 = vmatprep.subr.bf16.mxu0 %v2579_v9  ;;  %v2607_v59 = vpack.c.bf16 %v1805_v58, %v1803_v57 }
 0x5e4   : > { %2582 = vmatpush3.bf16.msra.mxu0 %v2581_v16  ;;  %v1810_v16 = vld [vmem:[%s3536_s23] sm:$0x3] }
 0x69a   : > { %v1512_v62 = vpop.f32.mrb[6].mxu0 }
 0x69b   : > { %v1513_v63 = vadd.f32 %v1512_v62, %v1439_v60  ;;  %v1514_v1 = vpop.f32.mrb[7].mxu0  ;;  %v1802_v60 = vld [vmem:[%s3500_s11 + $0xc0] sm:$0xff] }
 0x69c   : > { %v1515_v2 = vadd.f32 %v1514_v1, %v1443_v61  ;;  %v1804_v61 = vld [vmem:[%s3500_s11 + $0xd0] sm:$0xff]  ;;  %v1809_v1 = vld [vmem:[%s3500_s11 + $0xf8] sm:$0xff] }
 0x69d   : > { %v1517_v3 = vadd.f32 %v1513_v63, %v1215_v14  ;;  %v1585_v14 = vld [vmem:[%s3497_s8] sm:$0x3]  ;;  %v2609_v62 = vpack.c.bf16 %v1804_v61, %v1802_v60  ;;  %v1807_v63 = vld [vmem:[%s3500_s11 + $0xe8] sm:$0xff] }
 0x69e   : > { %v1518_v4 = vadd.f32 %v1515_v2, %v1216_v13  ;;  %v2583_v13 = vpack.c.bf16 %v1781_v12, %v1779_v11  ;;  %v1594_v17 = vrot.slane %v1585_v14, %v3256_v48  ;;  %v1590_v31 = vrot.slane %v1585_v14, %v3251_v46 }
 0x69f   : > { %v1519_v6 = vmax.f32 %v1517_v3, 0.0  ;;  %v2611_v2 = vpack.c.bf16 %v1809_v1, %v1807_v63  ;;  %v1806_v3 = vld [vmem:[%s3500_s11 + $0xe0] sm:$0xff]  ;;  %v1815_v11 = vrot.slane %v1810_v16, %v3251_v46  ;;  %v1819_v12 = vrot.slane %v1810_v16, %v3256_v48 }
 0x6a0   : > { %v1520_v5 = vmax.f32 %v1518_v4, 0.0  ;;  %2584 = vmatprep.subr.bf16.mxu0 %v2583_v13  ;;  %v1808_v4 = vld [vmem:[%s3500_s11 + $0xf0] sm:$0xff] }
 0x6a2   : > { %1661 = vmatprep.mubr.f32.mxu1 %v1520_v5  ;;  %v2613_v5 = vpack.c.bf16 %v1808_v4, %v1806_v3 }
 0x6a3   : > { %1662 = vmatmul.mubr.f32.vlgmr.msra.gmra.mrb[6].mxu1 %v1519_v6 }
 0x776   : > { %v1663_v32 = vpop.f32.mrb[6].mxu1 }
 0x777   : > { %v1665_v20 = vpop.f32.mrb[7].mxu1  ;;  %v1664_v23 = vadd.f32 %v1663_v32, %v1590_v31 }
 0x778   : > { %v1666_v21 = vadd.f32 %v1665_v20, %v1594_v17 }
 0x77a   : > { %1771 = vmatprep.mubr.f32.mxu0 %v1666_v21 }
 0x77b   : > { %1772 = vmatmul.mubr.f32.vlgmr.msra.gmra.mrb[8].mxu0 %v1664_v23 }
 0x77c   : > { %2586 = vmatpush1.bf16.msra.mxu0 %v2585_v22  ;;  %1886 = vmatprep.mubr.f32.mxu0 %v2896_v0  ;;  %v2593_v0 = vpack.c.bf16 %v1788_v36, %v1786_v35 }
 0x77d   : > { %2588 = vmatprep.subr.bf16.mxu0 %v2587_v24 }
 0x780   : > { %2590 = vmatpush1.bf16.msra.mxu0 %v2589_v29 }
 0x781   : > { %2592 = vmatprep.subr.bf16.mxu0 %v2591_v30 }
 0x784   : > { %2594 = vmatpush1.bf16.msra.mxu0 %v2593_v0 }
 0x785   : > { %2596 = vmatprep.subr.bf16.mxu0 %v2595_v56 }
 0x788   : > { %2598 = vmatpush1.bf16.msra.mxu0 %v2597_v40 }
 0x789   : > { %2600 = vmatprep.subr.bf16.mxu0 %v2599_v41 }
 0x78c   : > { %2602 = vmatpush1.bf16.msra.mxu0 %v2601_v47 }
 0x78d   : > { %2604 = vmatprep.subr.bf16.mxu0 %v2603_v49 }
 0x790   : > { %2606 = vmatpush1.bf16.msra.mxu0 %v2605_v53 }
 0x791   : > { %2608 = vmatprep.subr.bf16.mxu0 %v2607_v59 }
 0x794   : > { %2610 = vmatpush1.bf16.msra.mxu0 %v2609_v62 }
 0x795   : > { %2612 = vmatprep.subr.bf16.mxu0 %v2611_v2 }
 0x798   : > { %2614 = vmatpush1.bf16.msra.mxu0 %v2613_v5 }
 0x84e   : > { %v2068_v6 = vpop.f32.mrb[8].mxu0 }
 0x84f   : > { %v2069_v8 = vpop.f32.mrb[9].mxu0 }
 0x850   : > { %v2070_v9 = vadd.f32 %v2069_v8, %v2068_v6 }
 0x852   : > { %v1774_v10 = vadd.f32 %v2070_v9, %v2029_v7 }
 0x854   : > { %v1777_v15 = vmax.f32 %v1774_v10, 0.0 }
 0x856   : > { %1887 = vmatmul.mubr.f32.vlgmr.msra.gmra.mrb[10].mxu0 %v1777_v15 }
 0x929   : > { %v1888_v13 = vpop.f32.mrb[10].mxu0 }
 0x92a   : > { %v1889_v14 = vadd.f32 %v1888_v13, %v1815_v11  ;;  %v1890_v17 = vpop.f32.mrb[11].mxu0 }
 0x92b   : > { %v1891_v31 = vadd.f32 %v1890_v17, %v1819_v12 }
 0x92c   : > { %1893 = vst [vmem:[%s490_s18] sm:$0xff] %v1889_v14 }
 0x92d   : > { %1895 = vst.msk [vmem:[%s490_s18 + $0x8] sm:$0xff] %vm1894_vm0, %v1891_v31 }
 0x92e   : > { %2825 = shalt.err (!%p2822_p10)
}
 0x92f   : > { %s2826_s30 = scalar_lea.hbm %s3447_s27, 256  ;;  %s2830_s20 = scalar_lea.hbm %s3538_s15, 512 }
 0x930   : > { %p2827_p0 = scmp.ne.s32.totalorder %s3447_s27, %s2826_s30  ;;  %p2831_p4 = scmp.lt.u32.totalorder %s3447_s27, %s3538_s15 }
 0x931   : > { %p2832_p12 = scmp.lt.u32.totalorder %s2830_s20, %s2826_s30  ;;  %p2834_p8 = scmp.lt.u32.totalorder %s2826_s30, %s3447_s27 }
 0x932   : > { %p2828_p2 = pnand %p2827_p0, %p3539_p11 }
 0x933   : > { %p2833_p7 = por %p2832_p12, %p2831_p4 }
 0x934   : > { %p2829_p3 = pneg %p2828_p2 }
 0x935   : > { %p2835_p13 = por %p2834_p8, %p2833_p7 }
 0x937   : > { %p2836_p1 = pnand %p2835_p13, %p2829_p3 }
 0x939   : > { %2839 = shalt.err (!%p2836_p1)
}
 0x93a   : > { %2631 = dma.vmem_to_hbm [thread:$0]  (%p3539_p11), %s3449_s19, 256, %s3447_s27, %s1897_s29  }
 0x93b PF: > { %s3540_s18 = sld [smem:[#allocation17_spill]]  ;;  %s3541_s21 = sld [smem:[#allocation15_spill]] }
 0x93c   : > { %s3542_s24 = sld [smem:[#allocation21_spill]] }
 0x941   : > { %p2658_p6 = scmp.ge.s32.totalorder %s3540_s18, 2  ;;  %s1923_s22 = sand.u32 1, %s3541_s21  }
 0x942   : > { %p3543_p9 = scmp.ne.s32.totalorder %s3542_s24, 0  ;;  %s1924_s16 = scalar_lea.sflag [#allocation4], %s1923_s22 }
 0x944   : > { %p2647_p5 = pnand %p2658_p6, %p3543_p9 }
 0x946   : > { %2869 = dma.done.wait (!%p2647_p5), %s1924_s16, 256  }
 0x947   : > { %2871 = vsyncadd (!%p2647_p5), %s1924_s16, 4294967040  ;;  %s3544_s28 = sld [smem:[#allocation18_spill]]  ;;  %s3545_s17 = sld [smem:[#allocation16_spill]] }
 0x948   : > { %s3546_s27 = sld [smem:[#allocation19_spill]]  ;;  %s3547_s25 = smov %s2878_s26 }
 0x94d   : > { %p26_p10 = scmp.ge.s32.totalorder %s3544_s28, 4   ;;  %s3548_s26 = smov %s3545_s17 }
 0x94f   :  { %28 = sbr.rel (!%p26_p10) target bundleno = 9 (0x9), region = 132 }
 0x956   :  { %1929 = vsyncpa [#allocation3], 1 }
 0x957   :  { %1931 = vsyncpa [#allocation3 + $0x1], 1 }
 0x958   :  { %1932 = vsyncpa [#allocation6], 1 }
 0x959   :  { %1933 = vsyncpa [#allocation9], 1 }
 0x95a   :  { %1934 = vsyncpa [#allocation4], 1 }
 0x95b   :  { %1936 = vsyncpa [#allocation4 + $0x1], 1 }

</bundles_post_ra>
